<compile_context>
chip_gen: v7x
topology: tpu7x:2x2x1
jax: 0.10.0
libtpu: 0.0.40
codegen_flags: <defaults>
</compile_context>

<pallas_src>
import functools

import jax
import jax.numpy as jnp
from jax import lax
from jax.experimental import pallas as pl
from jax.experimental.pallas import tpu as pltpu


_LEFT_HALO = 8  # left pad width in the scratch -> interior write is sublane-aligned


# ----------------------------------------------------------------------------
# Kernel: one batch-block of NHWC images per grid step.
# ----------------------------------------------------------------------------
def _residual_kernel(x_ref, w3_ref, w1_ref, o_ref, xpad_ref, *, H, W):
    """Fused  x + Conv1x1(relu(Conv3x3(relu(x))))  on a (BN, H, W, C) block."""
    BN, _, _, C = x_ref.shape
    WPAD = xpad_ref.shape[2]
    L = _LEFT_HALO
    M = BN * H * W
    dt = xpad_ref.dtype

    x = x_ref[...]                                        # (BN, H, W, C)

    # ---- zero only the halo of the padded scratch (per step; cheap, and
    # correct regardless of how a "parallel" grid axis is partitioned) -------
    zcol = jnp.zeros((BN, H + 2, 1, C), dt)
    xpad_ref[:, :, L - 1:L, :] = zcol                     # left pad column
    xpad_ref[:, :, L + W:L + W + 1, :] = zcol             # right pad column
    zrow = jnp.zeros((BN, 1, WPAD, C), dt)
    xpad_ref[:, 0:1, :, :] = zrow                         # top pad row
    xpad_ref[:, H + 1:H + 2, :, :] = zrow                 # bottom pad row

    # ---- stage relu(x); interior write starts at sublane 0 (offset L=8) ----
    # relu commutes with zero padding, so padding after the relu is identical.
    xpad_ref[:, 1:H + 1, L:L + W, :] = jnp.maximum(x, 0.0).astype(dt)

    # ---- im2col over kx only: lane-axis concat of the three column shifts.
    # (BN, H+2, W, 3C); channel order kx = 0,1,2 then cin.
    xw = jnp.concatenate(
        [xpad_ref[:, :, L - 1:L - 1 + W, :],
         xpad_ref[:, :, L:L + W, :],
         xpad_ref[:, :, L + 1:L + 1 + W, :]],
        axis=-1)

    # ---- 3x3 conv as 3 accumulated MXU dots over ky (K = 3C each), f32 acc.
    # w3 rows are (ky, kx, cin)-major, matching xw's lane order per ky slice.
    acc = None
    for ky in range(3):
        rows = xw[:, ky:ky + H].reshape(M, 3 * C)
        d = jnp.dot(rows, w3_ref[ky * 3 * C:(ky + 1) * 3 * C, :],
                    preferred_element_type=jnp.float32)
        acc = d if acc is None else acc + d               # (M, Rh) f32

    t = jnp.maximum(acc, 0.0)                             # relu, stays in regs

    # ---- 1x1 conv + residual add (fused) -----------------------------------
    y = jnp.dot(t.astype(w1_ref.dtype), w1_ref[...],
                preferred_element_type=jnp.float32)       # (M, C)
    out = x.reshape(M, C).astype(jnp.float32) + y
    o_ref[...] = out.reshape(BN, H, W, C).astype(o_ref.dtype)


# ----------------------------------------------------------------------------
# NHWC entry point (preferred: no layout transposes around the kernel).
# ----------------------------------------------------------------------------
def residual_layer_nhwc(x_nhwc, w3_hwio, w1, *, images_per_block=None):
    """x: (N,H,W,C); w3_hwio: (3,3,C,Rh); w1: (Rh,C)."""
    N, H, W, C = x_nhwc.shape
    assert w3_hwio.shape[:3] == (3, 3, C)
    Rh = w3_hwio.shape[-1]
    assert w1.shape == (Rh, C), "residual add needs out_ch == in_ch"

    if images_per_block is None:
        # Grid extent 2 when possible (keeps both v7x TCs busy); otherwise
        # fold the whole batch (minimal per-step overhead on v5e/v6e).
        images_per_block = N // 2 if (N % 2 == 0 and N >= 2) else N
    BN = images_per_block
    assert N % BN == 0
    G = N // BN

    # Padded-scratch width: 8-wide left halo (sublane-aligned interior write),
    # right side rounded up so the buffer's sublane extent is a multiple of 8.
    WPAD = _LEFT_HALO + ((W + 1 + 7) // 8) * 8

    w3_mat = w3_hwio.reshape(9 * C, Rh).astype(x_nhwc.dtype)  # (ky,kx,cin)-major
    w1_mat = w1.astype(x_nhwc.dtype)

    kern = functools.partial(_residual_kernel, H=H, W=W)
    return pl.pallas_call(
        kern,
        out_shape=jax.ShapeDtypeStruct((N, H, W, C), x_nhwc.dtype),
        grid_spec=pltpu.PrefetchScalarGridSpec(
            num_scalar_prefetch=0,
            grid=(G,),
            in_specs=[
                pl.BlockSpec((BN, H, W, C), lambda n: (n, 0, 0, 0)),
                pl.BlockSpec((9 * C, Rh), lambda n: (0, 0)),
                pl.BlockSpec((Rh, C), lambda n: (0, 0)),
            ],
            out_specs=pl.BlockSpec((BN, H, W, C), lambda n: (n, 0, 0, 0)),
            scratch_shapes=[pltpu.VMEM((BN, H + 2, WPAD, C), x_nhwc.dtype)],
        ),
        compiler_params=pltpu.CompilerParams(
            dimension_semantics=("parallel",)),
    )(x_nhwc, w3_mat, w1_mat)


# ----------------------------------------------------------------------------
# PyTorch-layout wrapper (NCHW activations, OIHW weights).  In a real NHWC
# pipeline call residual_layer_nhwc directly and skip these transposes.
# ----------------------------------------------------------------------------
def residual_layer_forward(x_nchw, w3_oihw, w1_oihw, **kw):
    """w3_oihw: (num_hiddens, in_ch, 3, 3); w1_oihw: (out_ch, num_hiddens, 1, 1)."""
    assert w1_oihw.shape[0] == x_nchw.shape[1], "residual add needs out_ch == in_ch"
    x = jnp.transpose(x_nchw, (0, 2, 3, 1))              # -> NHWC
    w3 = jnp.transpose(w3_oihw, (2, 3, 1, 0))            # -> HWIO (3,3,Cin,Rh)
    w1 = jnp.transpose(w1_oihw[:, :, 0, 0], (1, 0))      # -> (Rh, Cout)
    y = residual_layer_nhwc(x, w3, w1, **kw)
    return jnp.transpose(y, (0, 3, 1, 2))                # -> NCHW


# ----------------------------------------------------------------------------
# Pure-JAX NHWC reference for correctness.
# ----------------------------------------------------------------------------
def reference_nhwc(x, w3_hwio, w1):
    h = jax.nn.relu(x)
    h = lax.conv_general_dilated(
        h, w3_hwio, (1, 1), "SAME",
        dimension_numbers=("NHWC", "HWIO", "NHWC"),
        precision=lax.Precision.HIGHEST)
    h = jax.nn.relu(h)
    h = jnp.einsum("nhwc,cd->nhwd", h, w1, precision=lax.Precision.HIGHEST)
    return x + h


if __name__ == "__main__":
    # VQ-VAE v2 residual-stack shapes: latent 16x16, hidden 128, res-hidden 64.
    N, C, RH, H, W = 2, 128, 64, 16, 16

    key = jax.random.PRNGKey(0)
    kxk, k3, k1 = jax.random.split(key, 3)
    x_nhwc = jax.random.normal(kxk, (N, H, W, C), jnp.float32)
    w3_hwio = jax.random.normal(k3, (3, 3, C, RH), jnp.float32) / jnp.sqrt(9 * C)
    w1_mat = jax.random.normal(k1, (RH, C), jnp.float32) / jnp.sqrt(RH)

    # Primary NHWC path (no layout transposes around the kernel).
    out = jax.block_until_ready(residual_layer_nhwc(x_nhwc, w3_hwio, w1_mat))
    ref = reference_nhwc(x_nhwc, w3_hwio, w1_mat)
    assert out.shape == ref.shape, (out.shape, ref.shape)
    assert jnp.allclose(out, ref, atol=2e-3, rtol=2e-3), \
        float(jnp.max(jnp.abs(out - ref)))

    # PyTorch-layout wrapper (matches the nn.Module interface).
    x_nchw = jnp.transpose(x_nhwc, (0, 3, 1, 2))
    w3_oihw = jnp.transpose(w3_hwio, (3, 2, 0, 1))
    w1_oihw = jnp.transpose(w1_mat, (1, 0))[:, :, None, None]
    out2 = jax.block_until_ready(residual_layer_forward(x_nchw, w3_oihw, w1_oihw))
    ref2 = jnp.transpose(ref, (0, 3, 1, 2))
    assert jnp.allclose(out2, ref2, atol=2e-3, rtol=2e-3), \
        float(jnp.max(jnp.abs(out2 - ref2)))

    print("KERNEL_OK")
</pallas_src>

<mosaic_0001>
module attributes {stable_mosaic.version = 11 : i64} {
  func.func @_residual_kernel(%arg0: i32, %arg1: memref<1x16x16x128xf32, #tpu.memory_space<vmem>>, %arg2: memref<1152x64xf32, #tpu.memory_space<vmem>>, %arg3: memref<64x128xf32, #tpu.memory_space<vmem>>, %arg4: memref<1x16x16x128xf32, #tpu.memory_space<vmem>>, %arg5: memref<1x18x32x128xf32, #tpu.memory_space<vmem>>) attributes {dimension_semantics = [#tpu.dimension_semantics<parallel>], iteration_bounds = array<i64: 2>, scalar_prefetch = 0 : i64, scratch_operands = 1 : i64, tpu.core_type = #tpu.core_type<tc>, window_params = [{transform_indices = @transform_0, window_bounds = array<i64: 1, 16, 16, 128>}, {pipeline_mode = #tpu.pipeline_mode<synchronous>, transform_indices = @transform_1, window_bounds = array<i64: 1152, 64>}, {pipeline_mode = #tpu.pipeline_mode<synchronous>, transform_indices = @transform_2, window_bounds = array<i64: 64, 128>}, {transform_indices = @transform_3, window_bounds = array<i64: 1, 16, 16, 128>}]} {
    %c0 = arith.constant 0 : index
    %c0_0 = arith.constant 0 : index
    %c0_1 = arith.constant 0 : index
    %c0_2 = arith.constant 0 : index
    %0 = vector.load %arg1[%c0, %c0_0, %c0_1, %c0_2] : memref<1x16x16x128xf32, #tpu.memory_space<vmem>>, vector<1x16x16x128xf32>
    %cst = arith.constant 0.000000e+00 : f32
    %1 = vector.broadcast %cst : f32 to vector<1x18x1x128xf32>
    %c0_3 = arith.constant 0 : index
    %c0_4 = arith.constant 0 : index
    %c7 = arith.constant 7 : index
    %c0_5 = arith.constant 0 : index
    %2 = vector.load %arg5[%c0_3, %c0_4, %c7, %c0_5] : memref<1x18x32x128xf32, #tpu.memory_space<vmem>>, vector<1x18x1x128xf32>
    tpu.vector_store %arg5[%c0_3, %c0_4, %c7, %c0_5], %1 {strides = array<i32>} : memref<1x18x32x128xf32, #tpu.memory_space<vmem>>, vector<1x18x1x128xf32>,
    %c0_6 = arith.constant 0 : index
    %c0_7 = arith.constant 0 : index
    %c24 = arith.constant 24 : index
    %c0_8 = arith.constant 0 : index
    %3 = vector.load %arg5[%c0_6, %c0_7, %c24, %c0_8] : memref<1x18x32x128xf32, #tpu.memory_space<vmem>>, vector<1x18x1x128xf32>
    tpu.vector_store %arg5[%c0_6, %c0_7, %c24, %c0_8], %1 {strides = array<i32>} : memref<1x18x32x128xf32, #tpu.memory_space<vmem>>, vector<1x18x1x128xf32>,
    %cst_9 = arith.constant 0.000000e+00 : f32
    %4 = vector.broadcast %cst_9 : f32 to vector<1x1x32x128xf32>
    %c0_10 = arith.constant 0 : index
    %c0_11 = arith.constant 0 : index
    %c0_12 = arith.constant 0 : index
    %c0_13 = arith.constant 0 : index
    %5 = vector.load %arg5[%c0_10, %c0_11, %c0_12, %c0_13] : memref<1x18x32x128xf32, #tpu.memory_space<vmem>>, vector<1x1x32x128xf32>
    tpu.vector_store %arg5[%c0_10, %c0_11, %c0_12, %c0_13], %4 {strides = array<i32>} : memref<1x18x32x128xf32, #tpu.memory_space<vmem>>, vector<1x1x32x128xf32>,
    %c0_14 = arith.constant 0 : index
    %c17 = arith.constant 17 : index
    %c0_15 = arith.constant 0 : index
    %c0_16 = arith.constant 0 : index
    %6 = vector.load %arg5[%c0_14, %c17, %c0_15, %c0_16] : memref<1x18x32x128xf32, #tpu.memory_space<vmem>>, vector<1x1x32x128xf32>
    tpu.vector_store %arg5[%c0_14, %c17, %c0_15, %c0_16], %4 {strides = array<i32>} : memref<1x18x32x128xf32, #tpu.memory_space<vmem>>, vector<1x1x32x128xf32>,
    %cst_17 = arith.constant 0.000000e+00 : f32
    %7 = vector.broadcast %cst_17 : f32 to vector<1x16x16x128xf32>
    %8 = arith.maximumf %0, %7 : vector<1x16x16x128xf32>
    %c0_18 = arith.constant 0 : index
    %c1 = arith.constant 1 : index
    %c8 = arith.constant 8 : index
    %c0_19 = arith.constant 0 : index
    %9 = vector.load %arg5[%c0_18, %c1, %c8, %c0_19] : memref<1x18x32x128xf32, #tpu.memory_space<vmem>>, vector<1x16x16x128xf32>
    tpu.vector_store %arg5[%c0_18, %c1, %c8, %c0_19], %8 {strides = array<i32>} : memref<1x18x32x128xf32, #tpu.memory_space<vmem>>, vector<1x16x16x128xf32>,
    %c0_20 = arith.constant 0 : index
    %c0_21 = arith.constant 0 : index
    %c7_22 = arith.constant 7 : index
    %c0_23 = arith.constant 0 : index
    %10 = vector.load %arg5[%c0_20, %c0_21, %c7_22, %c0_23] : memref<1x18x32x128xf32, #tpu.memory_space<vmem>>, vector<1x18x16x128xf32>
    %c0_24 = arith.constant 0 : index
    %c0_25 = arith.constant 0 : index
    %c8_26 = arith.constant 8 : index
    %c0_27 = arith.constant 0 : index
    %11 = vector.load %arg5[%c0_24, %c0_25, %c8_26, %c0_27] : memref<1x18x32x128xf32, #tpu.memory_space<vmem>>, vector<1x18x16x128xf32>
    %c0_28 = arith.constant 0 : index
    %c0_29 = arith.constant 0 : index
    %c9 = arith.constant 9 : index
    %c0_30 = arith.constant 0 : index
    %12 = vector.load %arg5[%c0_28, %c0_29, %c9, %c0_30] : memref<1x18x32x128xf32, #tpu.memory_space<vmem>>, vector<1x18x16x128xf32>
    %13 = tpu.concatenate %10, %11, %12 in 3 : vector<1x18x16x128xf32>, vector<1x18x16x128xf32>, vector<1x18x16x128xf32> -> vector<1x18x16x384xf32>
    %14 = vector.extract_strided_slice %13 {offsets = [0, 0, 0, 0], sizes = [1, 16, 16, 384], strides = [1, 1, 1, 1]} : vector<1x18x16x384xf32> to vector<1x16x16x384xf32>
    %15 = vector.shape_cast %14 : vector<1x16x16x384xf32> to vector<256x384xf32>
    %c0_31 = arith.constant 0 : index
    %c0_32 = arith.constant 0 : index
    %16 = vector.load %arg2[%c0_31, %c0_32] : memref<1152x64xf32, #tpu.memory_space<vmem>>, vector<384x64xf32>
    %cst_33 = arith.constant dense<0.000000e+00> : vector<256x64xf32>
    %17 = tpu.matmul %15, %16, %cst_33 {dimension_numbers = #tpu.dot_dimension_numbers<[1], [0], [0], [1], [0, 0, 1, 1], [], []>} : vector<256x384xf32>, vector<384x64xf32>, vector<256x64xf32> -> vector<256x64xf32>
    %18 = vector.extract_strided_slice %13 {offsets = [0, 1, 0, 0], sizes = [1, 16, 16, 384], strides = [1, 1, 1, 1]} : vector<1x18x16x384xf32> to vector<1x16x16x384xf32>
    %19 = vector.shape_cast %18 : vector<1x16x16x384xf32> to vector<256x384xf32>
    %c384 = arith.constant 384 : index
    %c0_34 = arith.constant 0 : index
    %20 = vector.load %arg2[%c384, %c0_34] : memref<1152x64xf32, #tpu.memory_space<vmem>>, vector<384x64xf32>
    %cst_35 = arith.constant dense<0.000000e+00> : vector<256x64xf32>
    %21 = tpu.matmul %19, %20, %cst_35 {dimension_numbers = #tpu.dot_dimension_numbers<[1], [0], [0], [1], [0, 0, 1, 1], [], []>} : vector<256x384xf32>, vector<384x64xf32>, vector<256x64xf32> -> vector<256x64xf32>
    %22 = arith.addf %17, %21 : vector<256x64xf32>
    %23 = vector.extract_strided_slice %13 {offsets = [0, 2, 0, 0], sizes = [1, 16, 16, 384], strides = [1, 1, 1, 1]} : vector<1x18x16x384xf32> to vector<1x16x16x384xf32>
    %24 = vector.shape_cast %23 : vector<1x16x16x384xf32> to vector<256x384xf32>
    %c768 = arith.constant 768 : index
    %c0_36 = arith.constant 0 : index
    %25 = vector.load %arg2[%c768, %c0_36] : memref<1152x64xf32, #tpu.memory_space<vmem>>, vector<384x64xf32>
    %cst_37 = arith.constant dense<0.000000e+00> : vector<256x64xf32>
    %26 = tpu.matmul %24, %25, %cst_37 {dimension_numbers = #tpu.dot_dimension_numbers<[1], [0], [0], [1], [0, 0, 1, 1], [], []>} : vector<256x384xf32>, vector<384x64xf32>, vector<256x64xf32> -> vector<256x64xf32>
    %27 = arith.addf %22, %26 : vector<256x64xf32>
    %cst_38 = arith.constant 0.000000e+00 : f32
    %28 = vector.broadcast %cst_38 : f32 to vector<256x64xf32>
    %29 = arith.maximumf %27, %28 : vector<256x64xf32>
    %c0_39 = arith.constant 0 : index
    %c0_40 = arith.constant 0 : index
    %30 = vector.load %arg3[%c0_39, %c0_40] : memref<64x128xf32, #tpu.memory_space<vmem>>, vector<64x128xf32>
    %cst_41 = arith.constant dense<0.000000e+00> : vector<256x128xf32>
    %31 = tpu.matmul %29, %30, %cst_41 {dimension_numbers = #tpu.dot_dimension_numbers<[1], [0], [0], [1], [0, 0, 1, 1], [], []>} : vector<256x64xf32>, vector<64x128xf32>, vector<256x128xf32> -> vector<256x128xf32>
    %32 = vector.shape_cast %0 : vector<1x16x16x128xf32> to vector<256x128xf32>
    %33 = arith.addf %32, %31 : vector<256x128xf32>
    %34 = vector.shape_cast %33 : vector<256x128xf32> to vector<1x16x16x128xf32>
    %c0_42 = arith.constant 0 : index
    %c0_43 = arith.constant 0 : index
    %c0_44 = arith.constant 0 : index
    %c0_45 = arith.constant 0 : index
    %35 = vector.load %arg4[%c0_42, %c0_43, %c0_44, %c0_45] : memref<1x16x16x128xf32, #tpu.memory_space<vmem>>, vector<1x16x16x128xf32>
    tpu.vector_store %arg4[%c0_42, %c0_43, %c0_44, %c0_45], %34 {strides = array<i32>} : memref<1x16x16x128xf32, #tpu.memory_space<vmem>>, vector<1x16x16x128xf32>,
    return
  }
  func.func @transform_0(%arg0: i32) -> (i32, i32, i32, i32) {
    %c0_i32 = arith.constant 0 : i32
    %c0_i32_0 = arith.constant 0 : i32
    %c0_i32_1 = arith.constant 0 : i32
    %c0_i32_2 = arith.constant 0 : i32
    return %arg0, %c0_i32, %c0_i32_0, %c0_i32_1 : i32, i32, i32, i32
  }
  func.func @transform_1(%arg0: i32) -> (i32, i32) {
    %c0_i32 = arith.constant 0 : i32
    %c0_i32_0 = arith.constant 0 : i32
    %c0_i32_1 = arith.constant 0 : i32
    return %c0_i32, %c0_i32_0 : i32, i32
  }
  func.func @transform_2(%arg0: i32) -> (i32, i32) {
    %c0_i32 = arith.constant 0 : i32
    %c0_i32_0 = arith.constant 0 : i32
    %c0_i32_1 = arith.constant 0 : i32
    return %c0_i32, %c0_i32_0 : i32, i32
  }
  func.func @transform_3(%arg0: i32) -> (i32, i32, i32, i32) {
    %c0_i32 = arith.constant 0 : i32
    %c0_i32_0 = arith.constant 0 : i32
    %c0_i32_1 = arith.constant 0 : i32
    %c0_i32_2 = arith.constant 0 : i32
    return %arg0, %c0_i32, %c0_i32_0, %c0_i32_1 : i32, i32, i32, i32
  }
}

</mosaic_0001>

<bundles_post_ra>
// kernel: tpu_custom_call.1
= control target key start
LH: loop header
LB: loop body
LE: loop exit
PB: predicated region body
PF: predicated region fallthrough
CT: control target
= control target key end

     0   :  { %8 = vsyncpa [#allocation4], 0  ;;  %s5094_s0 = inlined_call_operand.vmem [shape: f32[2,16,16,128], index: 0, kind: input, shape index: {}]   ;;  %s5095_s1 = inlined_call_operand.vmem [shape: f32[1152,64], index: 1, kind: input, shape index: {}]   ;;  %s5096_s2 = inlined_call_operand.vmem [shape: f32[64,128], index: 2, kind: input, shape index: {}]   ;;  %s5097_s3 = inlined_call_operand.hbm [shape: f32[2,16,16,128], index: 3, kind: output, shape index: {}]  }
   0x1   :  { %10 = vsyncpa [#allocation4 + $0x1], 0  ;;  %s3468_s12 = smov 0   ;;  %s3470_s13 = smov 0  }
   0x2   :  { %s3472_s14 = smov 0   ;;  %s3474_s15 = smov 0  }
   0x3 LB: > { %s3489_s16 = sadd.s32 4294967295, %s3441_s15   ;;  %s2447_s17 = sadd.s32 4294967294, %s3441_s15   ;;  %s3441_s15 = sphi %s3474_s15, %s5178_s15   ;;  %s3437_s14 = sphi %s3472_s14, %s5177_s14   ;;  %s3433_s13 = sphi %s3470_s13, %s5176_s13   ;;  %s3429_s12 = sphi %s3468_s12, %s5175_s12  }
   0x4   : > { %s3493_s18 = sadd.s32 1, %s3441_s15   ;;  %s91_s19 = sadd.s32 1, %s3437_s14 }
   0x5   : > { %s88_s20 = ssub.s32 %s3441_s15, %s3493_s18  ;;  %p101_p0 = scmp.ne.s32.totalorder %s3437_s14, %s3433_s13 }
   0x6   : > { %p89_p1 = scmp.eq.s32.totalorder %s88_s20, 0  ;;  %p102_p2 = scmp.eq.s32.totalorder %s3489_s16, 1 }
   0x7   : > { %p107_p3 = scmp.ne.s32.totalorder %s3433_s13, %s3429_s12  ;;  %p108_p4 = scmp.eq.s32.totalorder %s2447_s17, 1 }
   0x8   : > { %s3504_s21 = scalar_select %p89_p1, %s3437_s14, %s91_s19  }
   0x9   : > { %p3506_p5 = por %p102_p2, %p101_p0  ;;  %p3510_p6 = por %p108_p4, %p107_p3 }
   0xa   : > { %p2450_p7 = scmp.ge.s32.totalorder %s3441_s15, 1  ;;  %p140_p8 = scmp.lt.s32.totalorder %s3441_s15, 3 }
   0xc   : > { %p141_p9 = pnand %p2450_p7, %p140_p8 }
   0xe   : > { %144 = sbr.rel (%p141_p9) target bundleno = 839 (0x347), region = 32 }
  0x15   : > { %v467_v0 = vld [vmem:[%s5095_s1 + $0x180] sm:$0xff]  ;;  %v468_v1 = vld [vmem:[%s5095_s1 + $0x188] sm:$0xff]  ;;  %p164_p10 = scmp.lt.s32.totalorder %s3489_s16, 1  ;;  %v5102_v3 = vmov 0.0|0.0   ;;  %v3533_v6 = vld [vmem:[%s5095_s1 + $0x190] sm:$0xff]  ;;  %v5100_v8 = vmov 0.0  }
  0x16   : > { %v499_v2 = vld [vmem:[%s5095_s1 + $0x280] sm:$0xff]  ;;  %2981 = vmatprep.subr.bf16.mxu0 %v5102_v3  ;;  %v2982_v4 = vpack.c.bf16 %v468_v1, %v467_v0  ;;  %v500_v5 = vld [vmem:[%s5095_s1 + $0x288] sm:$0xff]  ;;  %v3538_v7 = vld [vmem:[%s5095_s1 + $0x198] sm:$0xff]  ;;  %220 = vst [vmem:[#allocation2 + $0x38] sm:$0x1] %v5100_v8  ;;  %vm1985_vm0 = vcmask 523264  }
  0x17   : > { %201 = vst [vmem:[#allocation2 + $0x7] sm:$0x1] %v5100_v8  ;;  %202 = vst [vmem:[#allocation2 + $0x27] sm:$0x1] %v5100_v8  ;;  %v3029_v9 = vpack.c.bf16 %v500_v5, %v499_v2  ;;  %v501_v10 = vld [vmem:[%s5095_s1 + $0x290] sm:$0xff]  ;;  %v502_v11 = vld [vmem:[%s5095_s1 + $0x298] sm:$0xff]  ;;  %v2985_v12 = vpack.c.bf16 %v3538_v7, %v3533_v6 }
  0x18   : > { %203 = vst [vmem:[#allocation2 + $0x47] sm:$0x1] %v5100_v8  ;;  %204 = vst [vmem:[#allocation2 + $0x67] sm:$0x1] %v5100_v8  ;;  %s165_s19 = scalar_select %p164_p10, %s3489_s16, 1  ;;  %2983 = vmatpush1.bf16.msra.mxu0 %v2982_v4  ;;  %v3033_v13 = vpack.c.bf16 %v502_v11, %v501_v10  ;;  %v503_v14 = vld [vmem:[%s5095_s1 + $0x2a0] sm:$0xff] }
  0x19   : > { %205 = vst [vmem:[#allocation2 + $0x87] sm:$0x1] %v5100_v8  ;;  %206 = vst [vmem:[#allocation2 + $0xa7] sm:$0x1] %v5100_v8  ;;  %v504_v15 = vld [vmem:[%s5095_s1 + $0x2a8] sm:$0xff]  ;;  %3030 = vmatprep.subr.bf16.mxu1 %v3029_v9  ;;  %2984 = vmatprep.subr.bf16.mxu0 %v5102_v3  ;;  %v471_v16 = vld [vmem:[%s5095_s1 + $0x1a0] sm:$0xff] }
  0x1a   : > { %207 = vst [vmem:[#allocation2 + $0xc7] sm:$0x1] %v5100_v8  ;;  %208 = vst [vmem:[#allocation2 + $0xe7] sm:$0x1] %v5100_v8  ;;  %v472_v17 = vld [vmem:[%s5095_s1 + $0x1a8] sm:$0xff]  ;;  %s2491_s4 = sshll.u32 %s165_s19, 8  ;;  %3032 = vmatpush3.bf16.msra.mxu1 %v3029_v9  ;;  %v3037_v18 = vpack.c.bf16 %v504_v15, %v503_v14 }
  0x1b   : > { %209 = vst [vmem:[#allocation2 + $0x107] sm:$0x1] %v5100_v8  ;;  %210 = vst [vmem:[#allocation2 + $0x127] sm:$0x1] %v5100_v8  ;;  %3034 = vmatprep.subr.bf16.mxu1 %v3033_v13  ;;  %v2988_v19 = vpack.c.bf16 %v472_v17, %v471_v16  ;;  %v505_v20 = vld [vmem:[%s5095_s1 + $0x2b0] sm:$0xff]  ;;  %v506_v21 = vld [vmem:[%s5095_s1 + $0x2b8] sm:$0xff]  ;;  %s3617_s11 = scalar_lea.vmem %s5094_s0, %s2491_s4 }
  0x1c   : > { %211 = vst [vmem:[#allocation2 + $0x147] sm:$0x1] %v5100_v8  ;;  %212 = vst [vmem:[#allocation2 + $0x167] sm:$0x1] %v5100_v8  ;;  %2986 = vmatpush1.bf16.msra.mxu0 %v2985_v12  ;;  %v473_v22 = vld [vmem:[%s5095_s1 + $0x1b0] sm:$0xff]  ;;  %v474_v23 = vld [vmem:[%s5095_s1 + $0x1b8] sm:$0xff]  ;;  %v3041_v24 = vpack.c.bf16 %v506_v21, %v505_v20 }
  0x1d   : > { %213 = vst [vmem:[#allocation2 + $0x187] sm:$0x1] %v5100_v8  ;;  %214 = vst [vmem:[#allocation2 + $0x1a7] sm:$0x1] %v5100_v8  ;;  %2987 = vmatprep.subr.bf16.mxu0 %v5102_v3  ;;  %v169_v25 = vld [vmem:[%s3617_s11] sm:$0xff]  ;;  %v2991_v26 = vpack.c.bf16 %v474_v23, %v473_v22  ;;  %v508_v28 = vld [vmem:[%s5095_s1 + $0x2c8] sm:$0xff] }
  0x1e   : > { %215 = vst [vmem:[#allocation2 + $0x1c7] sm:$0x1] %v5100_v8  ;;  %216 = vst [vmem:[#allocation2 + $0x1e7] sm:$0x1] %v5100_v8  ;;  %3036 = vmatpush3.bf16.msra.mxu1 %v3033_v13  ;;  %v507_v27 = vld [vmem:[%s5095_s1 + $0x2c0] sm:$0xff]  ;;  %v170_v29 = vld [vmem:[%s3617_s11 + $0x8] sm:$0xff] }
  0x1f   : > { %217 = vst [vmem:[#allocation2 + $0x207] sm:$0x1] %v5100_v8  ;;  %218 = vst [vmem:[#allocation2 + $0x227] sm:$0x1] %v5100_v8  ;;  %3038 = vmatprep.subr.bf16.mxu1 %v3037_v18  ;;  %v3634_v30 = vmax.f32 %v169_v25, 0.0  ;;  %v475_v31 = vld [vmem:[%s5095_s1 + $0x1c0] sm:$0xff]  ;;  %v3045_v37 = vpack.c.bf16 %v508_v28, %v507_v27 }
  0x20   : > { %219 = vst [vmem:[#allocation2 + $0x18] sm:$0x1] %v5100_v8  ;;  %221 = vst [vmem:[#allocation2 + $0x58] sm:$0x1] %v5100_v8  ;;  %2989 = vmatpush1.bf16.msra.mxu0 %v2988_v19  ;;  %v476_v32 = vld [vmem:[%s5095_s1 + $0x1c8] sm:$0xff]  ;;  %v3643_v33 = vmax.f32 %v170_v29, 0.0 }
  0x21   : > { %222 = vst [vmem:[#allocation2 + $0x78] sm:$0x1] %v5100_v8  ;;  %223 = vst [vmem:[#allocation2 + $0x98] sm:$0x1] %v5100_v8  ;;  %2990 = vmatprep.subr.bf16.mxu0 %v5102_v3  ;;  %v171_v34 = vld [vmem:[%s3617_s11 + $0x10] sm:$0xff]  ;;  %v172_v35 = vld [vmem:[%s3617_s11 + $0x18] sm:$0xff]  ;;  %579 = vmatprep.mubr.f32.mxu0 %v3634_v30  ;;  %v2994_v40 = vpack.c.bf16 %v476_v32, %v475_v31 }
  0x22   : > { %224 = vst [vmem:[#allocation2 + $0xb8] sm:$0x1] %v5100_v8  ;;  %225 = vst [vmem:[#allocation2 + $0xd8] sm:$0x1] %v5100_v8  ;;  %3040 = vmatpush3.bf16.msra.mxu1 %v3037_v18  ;;  %v3648_v36 = vmax.f32 %v171_v34, 0.0  ;;  %v3652_v38 = vmax.f32 %v172_v35, 0.0 }
  0x23   : > { %226 = vst [vmem:[#allocation2 + $0xf8] sm:$0x1] %v5100_v8  ;;  %227 = vst [vmem:[#allocation2 + $0x118] sm:$0x1] %v5100_v8  ;;  %3042 = vmatprep.subr.bf16.mxu1 %v3041_v24  ;;  %v173_v39 = vld [vmem:[%s3617_s11 + $0x20] sm:$0xff]  ;;  %v509_v41 = vld [vmem:[%s5095_s1 + $0x2d0] sm:$0xff] }
  0x24   : > { %228 = vst [vmem:[#allocation2 + $0x138] sm:$0x1] %v5100_v8  ;;  %229 = vst [vmem:[#allocation2 + $0x158] sm:$0x1] %v5100_v8  ;;  %2992 = vmatpush1.bf16.msra.mxu0 %v2991_v26  ;;  %v510_v42 = vld [vmem:[%s5095_s1 + $0x2d8] sm:$0xff]  ;;  %v174_v43 = vld [vmem:[%s3617_s11 + $0x28] sm:$0xff] }
  0x25   : > { %230 = vst [vmem:[#allocation2 + $0x178] sm:$0x1] %v5100_v8  ;;  %231 = vst [vmem:[#allocation2 + $0x198] sm:$0x1] %v5100_v8  ;;  %v3663_v44 = vmax.f32 %v173_v39, 0.0  ;;  %2993 = vmatprep.subr.bf16.mxu0 %v5102_v3  ;;  %v477_v45 = vld [vmem:[%s5095_s1 + $0x1d0] sm:$0xff]  ;;  %v3049_v51 = vpack.c.bf16 %v510_v42, %v509_v41 }
  0x26   : > { %232 = vst [vmem:[#allocation2 + $0x1b8] sm:$0x1] %v5100_v8  ;;  %233 = vst [vmem:[#allocation2 + $0x1d8] sm:$0x1] %v5100_v8  ;;  %v478_v46 = vld [vmem:[%s5095_s1 + $0x1d8] sm:$0xff]  ;;  %v3673_v47 = vmax.f32 %v174_v43, 0.0  ;;  %3044 = vmatpush3.bf16.msra.mxu1 %v3041_v24 }
  0x27   : > { %234 = vst [vmem:[#allocation2 + $0x1f8] sm:$0x1] %v5100_v8  ;;  %235 = vst [vmem:[#allocation2 + $0x218] sm:$0x1] %v5100_v8  ;;  %v175_v48 = vld [vmem:[%s3617_s11 + $0x30] sm:$0xff]  ;;  %v176_v49 = vld [vmem:[%s3617_s11 + $0x38] sm:$0xff]  ;;  %3046 = vmatprep.subr.bf16.mxu1 %v3045_v37  ;;  %v2997_v54 = vpack.c.bf16 %v478_v46, %v477_v45 }
  0x28   : > { %236 = vst [vmem:[#allocation2 + $0x238] sm:$0x1] %v5100_v8  ;;  %238 = vst [vmem:[#allocation2 + $0x8] sm:$0xff] %v5100_v8  ;;  %v3678_v50 = vmax.f32 %v175_v48, 0.0  ;;  %v3681_v52 = vmax.f32 %v176_v49, 0.0  ;;  %v177_v53 = vld [vmem:[%s3617_s11 + $0x40] sm:$0xff]  ;;  %2995 = vmatpush1.bf16.msra.mxu0 %v2994_v40 }
  0x29   : > { %239 = vst [vmem:[#allocation2 + $0x10] sm:$0xff] %v5100_v8  ;;  %243 = vst [vmem:[#allocation2 + $0x228] sm:$0xff] %v5100_v8  ;;  %v511_v55 = vld [vmem:[%s5095_s1 + $0x2e0] sm:$0xff]  ;;  %v512_v56 = vld [vmem:[%s5095_s1 + $0x2e8] sm:$0xff]  ;;  %v3692_v58 = vmax.f32 %v177_v53, 0.0  ;;  %2996 = vmatprep.subr.bf16.mxu0 %v5102_v3  ;;  %s161_s25 = sand.u32 1, %s3433_s13  }
  0x2a   : > { %244 = vst [vmem:[#allocation2 + $0x230] sm:$0xff] %v5100_v8  ;;  %237 = vst [vmem:[#allocation2] sm:$0xff] %v5100_v8  ;;  %v178_v57 = vld [vmem:[%s3617_s11 + $0x48] sm:$0xff]  ;;  %v479_v59 = vld [vmem:[%s5095_s1 + $0x1e0] sm:$0xff]  ;;  %3048 = vmatpush3.bf16.msra.mxu1 %v3045_v37  ;;  %v3053_v2 = vpack.c.bf16 %v512_v56, %v511_v55  ;;  %s2451_s26 = sshll.u32 %s161_s25, 8  ;;  %s2492_s28 = sshll.u32 %s3489_s16, 12 }
  0x2b   : > { %240 = vst [vmem:[#allocation2 + $0x18] sm:$0xff] %v5100_v8  ;;  %242 = vst [vmem:[#allocation2 + $0x220] sm:$0xff] %v5100_v8  ;;  %v480_v60 = vld [vmem:[%s5095_s1 + $0x1e8] sm:$0xff]  ;;  %v3702_v61 = vmax.f32 %v178_v57, 0.0  ;;  %v179_v62 = vld [vmem:[%s3617_s11 + $0x50] sm:$0xff]  ;;  %3050 = vmatprep.subr.bf16.mxu1 %v3049_v51  ;;  %s4978_s27 = scalar_lea.vmem [#allocation3], %s2451_s26  ;;  %s5044_s5 = scalar_lea.hbm %s5097_s3, %s2492_s28 }
  0x2c   : > { %245 = vst [vmem:[#allocation2 + $0x238] sm:$0xff] %v5100_v8  ;;  %279 = vst [vmem:[#allocation2 + $0x28] sm:$0xff] %v3634_v30  ;;  %v180_v0 = vld [vmem:[%s3617_s11 + $0x58] sm:$0xff]  ;;  %v3707_v1 = vmax.f32 %v179_v62, 0.0  ;;  %2998 = vmatpush1.bf16.msra.mxu0 %v2997_v54  ;;  %v3000_v5 = vpack.c.bf16 %v480_v60, %v479_v59  ;;  %v481_v6 = vld [vmem:[%s5095_s1 + $0x1f0] sm:$0xff]  ;;  %s2385_s29 = sshll.u32 %s4978_s27, 4  ;;  %s5046_s29 = int_to_ptr.vmem [resolvable:$true] %s2385_s29 }
  0x2d   : > { %280 = vst [vmem:[#allocation2 + $0x30] sm:$0xff] %v3643_v33  ;;  %281 = vst [vmem:[#allocation2 + $0x48] sm:$0xff] %v3648_v36  ;;  %v3710_v4 = vmax.f32 %v180_v0, 0.0  ;;  %v513_v7 = vld [vmem:[%s5095_s1 + $0x2f0] sm:$0xff]  ;;  %v514_v9 = vld [vmem:[%s5095_s1 + $0x2f8] sm:$0xff]  ;;  %2999 = vmatprep.subr.bf16.mxu0 %v5102_v3  ;;  %s5053_s16 = scalar_lea.sflag [#allocation4], %s161_s25 }
  0x2e   : > { %282 = vst [vmem:[#allocation2 + $0x50] sm:$0xff] %v3652_v38  ;;  %283 = vst [vmem:[#allocation2 + $0x68] sm:$0xff] %v3663_v44  ;;  %v482_v10 = vld [vmem:[%s5095_s1 + $0x1f8] sm:$0xff]  ;;  %v181_v11 = vld [vmem:[%s3617_s11 + $0x60] sm:$0xff]  ;;  %3052 = vmatpush3.bf16.msra.mxu1 %v3049_v51  ;;  %v3057_v15 = vpack.c.bf16 %v514_v9, %v513_v7  ;;  %s3379_s6 = scalar_lea.vmem %s5046_s29, 4096  ;;  %s3445_s7 = smov [#allocation3]  }
  0x2f   : > { %284 = vst [vmem:[#allocation2 + $0x70] sm:$0xff] %v3673_v47  ;;  %285 = vst [vmem:[#allocation2 + $0x88] sm:$0xff] %v3678_v50  ;;  %v182_v12 = vld [vmem:[%s3617_s11 + $0x68] sm:$0xff]  ;;  %v3729_v13 = vmax.f32 %v181_v11, 0.0  ;;  %3054 = vmatprep.subr.bf16.mxu1 %v3053_v2  ;;  %v183_v16 = vld [vmem:[%s3617_s11 + $0x70] sm:$0xff]  ;;  %v3003_v17 = vpack.c.bf16 %v482_v10, %v481_v6  ;;  %p3380_p11 = scmp.ne.s32.totalorder %s5046_s29, %s3379_s6  ;;  %s3383_s8 = sshll.u32 %s3445_s7, 4  ;;  %s3384_s8 = int_to_ptr.vmem [resolvable:$false] %s3383_s8 }
  0x30   : > { %286 = vst [vmem:[#allocation2 + $0x90] sm:$0xff] %v3681_v52  ;;  %287 = vst [vmem:[#allocation2 + $0xa8] sm:$0xff] %v3692_v58  ;;  %v3731_v14 = vmax.f32 %v182_v12, 0.0  ;;  %3001 = vmatpush1.bf16.msra.mxu0 %v3000_v5  ;;  %v184_v18 = vld [vmem:[%s3617_s11 + $0x78] sm:$0xff]  ;;  %v3737_v19 = vmax.f32 %v183_v16, 0.0  ;;  %v483_v20 = vld [vmem:[%s5095_s1 + $0x200] sm:$0xff]  ;;  %p3386_p0 = scmp.lt.s32.totalorder %s5046_s29, %s3384_s8 }
  0x31   : > { %288 = vst [vmem:[#allocation2 + $0xb0] sm:$0xff] %v3702_v61  ;;  %289 = vst [vmem:[#allocation2 + $0xc8] sm:$0xff] %v3707_v1  ;;  %3002 = vmatprep.subr.bf16.mxu0 %v5102_v3  ;;  %v484_v21 = vld [vmem:[%s5095_s1 + $0x208] sm:$0xff]  ;;  %v3746_v22 = vmax.f32 %v184_v18, 0.0  ;;  %v419_v23 = vld [vmem:[%s5095_s1] sm:$0xff]  ;;  %p3381_p12 = pnand %p3380_p11, %p3506_p5  ;;  %s3385_s9 = scalar_lea.vmem %s3384_s8, 8192 }
  0x32   : > { %290 = vst [vmem:[#allocation2 + $0xd0] sm:$0xff] %v3710_v4  ;;  %291 = vst [vmem:[#allocation2 + $0xe8] sm:$0xff] %v3729_v13  ;;  %3056 = vmatpush3.bf16.msra.mxu1 %v3053_v2  ;;  %v420_v24 = vld [vmem:[%s5095_s1 + $0x8] sm:$0xff]  ;;  %v185_v25 = vld [vmem:[%s3617_s11 + $0x80] sm:$0xff]  ;;  %v3006_v27 = vpack.c.bf16 %v484_v21, %v483_v20  ;;  %p3387_p1 = scmp.lt.s32.totalorder %s3385_s9, %s3379_s6 }
  0x33   : > { %292 = vst [vmem:[#allocation2 + $0xf0] sm:$0xff] %v3731_v14  ;;  %293 = vst [vmem:[#allocation2 + $0x108] sm:$0xff] %v3737_v19  ;;  %3058 = vmatprep.subr.bf16.mxu1 %v3057_v15  ;;  %v186_v26 = vld [vmem:[%s3617_s11 + $0x88] sm:$0xff]  ;;  %v3758_v28 = vmax.f32 %v185_v25, 0.0  ;;  %v485_v31 = vld [vmem:[%s5095_s1 + $0x210] sm:$0xff]  ;;  %v3062_v37 = vpack.c.bf16 %v420_v24, %v419_v23  ;;  %p3382_p13 = pneg %p3381_p12 }
  0x34   : > { %v385_v63 = vld [vmem:[#allocation2 + $0x29] sm:$0xff]  ;;  %294 = vst [vmem:[#allocation2 + $0x110] sm:$0xff] %v3746_v22  ;;  %3004 = vmatpush1.bf16.msra.mxu0 %v3003_v17  ;;  %v3760_v29 = vmax.f32 %v186_v26, 0.0  ;;  %v486_v32 = vld [vmem:[%s5095_s1 + $0x218] sm:$0xff]  ;;  %v189_v48 = vld [vmem:[%s3617_s11 + $0xa0] sm:$0xff]  ;;  %p3388_p2 = por %p3387_p1, %p3386_p0 }
  0x35   : > { %2709 = vmatprep.mubr.f32.mxu1 %v385_v63  ;;  %3005 = vmatprep.subr.bf16.mxu0 %v5102_v3  ;;  %v187_v34 = vld [vmem:[%s3617_s11 + $0x90] sm:$0xff]  ;;  %295 = vst [vmem:[#allocation2 + $0x128] sm:$0xff] %v3758_v28  ;;  %v188_v39 = vld [vmem:[%s3617_s11 + $0x98] sm:$0xff]  ;;  %v3009_v46 = vpack.c.bf16 %v486_v32, %v485_v31  ;;  %v190_v49 = vld [vmem:[%s3617_s11 + $0xa8] sm:$0xff]  ;;  %v3800_v54 = vmax.f32 %v189_v48, 0.0 }
  0x36   : > { %3060 = vmatpush3.bf16.msra.mxu1 %v3057_v15  ;;  %v3770_v35 = vld [vmem:[#allocation2 + $0x31] sm:$0xff]  ;;  %296 = vst [vmem:[#allocation2 + $0x130] sm:$0xff] %v3760_v29  ;;  %v3775_v40 = vmax.f32 %v187_v34, 0.0  ;;  %v3778_v41 = vld [vmem:[#allocation2 + $0x49] sm:$0xff]  ;;  %v3786_v45 = vmax.f32 %v188_v39, 0.0  ;;  %v487_v51 = vld [vmem:[%s5095_s1 + $0x220] sm:$0xff]  ;;  %p3389_p3 = pnand %p3388_p2, %p3382_p13 }
  0x37   : > { %3061 = vmatprep.subr.bf16.mxu1 %v5102_v3  ;;  %v421_v42 = vld [vmem:[%s5095_s1 + $0x10] sm:$0xff]  ;;  %v422_v43 = vld [vmem:[%s5095_s1 + $0x18] sm:$0xff]  ;;  %v488_v53 = vld [vmem:[%s5095_s1 + $0x228] sm:$0xff]  ;;  %v3802_v55 = vmax.f32 %v190_v49, 0.0  ;;  %299 = vst [vmem:[#allocation2 + $0x168] sm:$0xff] %v3800_v54 }
  0x38   : > { %3007 = vmatpush1.bf16.msra.mxu0 %v3006_v27  ;;  %297 = vst [vmem:[#allocation2 + $0x148] sm:$0xff] %v3775_v40  ;;  %298 = vst [vmem:[#allocation2 + $0x150] sm:$0xff] %v3786_v45  ;;  %v191_v56 = vld [vmem:[%s3617_s11 + $0xb0] sm:$0xff]  ;;  %v3065_v59 = vpack.c.bf16 %v422_v43, %v421_v42  ;;  %v192_v60 = vld [vmem:[%s3617_s11 + $0xb8] sm:$0xff]  ;;  %v3012_v6 = vpack.c.bf16 %v488_v53, %v487_v51 }
  0x39   : > { %2710 = vmatmul.mubr.f32.vlgmr.msra.gmra.mrb[0].mxu1 %v3770_v35  ;;  %3008 = vmatprep.subr.bf16.mxu0 %v5102_v3  ;;  %v3806_v57 = vld [vmem:[#allocation2 + $0x51] sm:$0xff]  ;;  %v3809_v62 = vmax.f32 %v191_v56, 0.0  ;;  %v3812_v63 = vld [vmem:[#allocation2 + $0x69] sm:$0xff]  ;;  %v423_v0 = vld [vmem:[%s5095_s1 + $0x20] sm:$0xff]  ;;  %300 = vst [vmem:[#allocation2 + $0x170] sm:$0xff] %v3802_v55  ;;  %v3822_v5 = vmax.f32 %v192_v60, 0.0 }
  0x3a   : > { %3063 = vmatpush1.bf16.msra.mxu1 %v3062_v37  ;;  %2712 = vmatprep.mubr.f32.mxu1 %v3778_v41  ;;  %v424_v2 = vld [vmem:[%s5095_s1 + $0x28] sm:$0xff]  ;;  %v193_v7 = vld [vmem:[%s3617_s11 + $0xc0] sm:$0xff]  ;;  %v489_v10 = vld [vmem:[%s5095_s1 + $0x230] sm:$0xff] }
  0x3b   : > { %3064 = vmatprep.subr.bf16.mxu1 %v5102_v3  ;;  %301 = vst [vmem:[#allocation2 + $0x188] sm:$0xff] %v3809_v62  ;;  %v194_v9 = vld [vmem:[%s3617_s11 + $0xc8] sm:$0xff]  ;;  %v490_v11 = vld [vmem:[%s5095_s1 + $0x238] sm:$0xff]  ;;  %302 = vst [vmem:[#allocation2 + $0x190] sm:$0xff] %v3822_v5  ;;  %v3836_v12 = vmax.f32 %v193_v7, 0.0  ;;  %v3068_v17 = vpack.c.bf16 %v424_v2, %v423_v0 }
  0x3c   : > { %3010 = vmatpush1.bf16.msra.mxu0 %v3009_v46  ;;  %v3838_v15 = vmax.f32 %v194_v9, 0.0  ;;  %v3841_v16 = vld [vmem:[#allocation2 + $0x71] sm:$0xff]  ;;  %v3846_v21 = vld [vmem:[#allocation2 + $0x89] sm:$0xff]  ;;  %v3015_v27 = vpack.c.bf16 %v490_v11, %v489_v10  ;;  %v197_v31 = vld [vmem:[%s3617_s11 + $0xe0] sm:$0xff] }
  0x3d   : > { %2713 = vmatmul.mubr.f32.gmra.mrb[2].mxu1 %v3806_v57  ;;  %3011 = vmatprep.subr.bf16.mxu0 %v5102_v3  ;;  %v195_v18 = vld [vmem:[%s3617_s11 + $0xd0] sm:$0xff]  ;;  %v196_v20 = vld [vmem:[%s3617_s11 + $0xd8] sm:$0xff]  ;;  %303 = vst [vmem:[#allocation2 + $0x1a8] sm:$0xff] %v3836_v12  ;;  %v491_v32 = vld [vmem:[%s5095_s1 + $0x240] sm:$0xff]  ;;  %v3872_v39 = vmax.f32 %v197_v31, 0.0 }
  0x3e   : > { %3066 = vmatpush1.bf16.msra.mxu1 %v3065_v59  ;;  %2715 = vmatprep.mubr.f32.mxu1 %v3812_v63  ;;  %v425_v23 = vld [vmem:[%s5095_s1 + $0x30] sm:$0xff]  ;;  %v426_v24 = vld [vmem:[%s5095_s1 + $0x38] sm:$0xff]  ;;  %304 = vst [vmem:[#allocation2 + $0x1b0] sm:$0xff] %v3838_v15  ;;  %v3856_v25 = vmax.f32 %v195_v18, 0.0  ;;  %v3858_v26 = vmax.f32 %v196_v20, 0.0  ;;  %v492_v34 = vld [vmem:[%s5095_s1 + $0x248] sm:$0xff] }
  0x3f   : > { %3067 = vmatprep.subr.bf16.mxu1 %v5102_v3  ;;  %v198_v37 = vld [vmem:[%s3617_s11 + $0xe8] sm:$0xff]  ;;  %v3875_v42 = vld [vmem:[#allocation2 + $0x91] sm:$0xff]  ;;  %v3071_v43 = vpack.c.bf16 %v426_v24, %v425_v23  ;;  %v427_v46 = vld [vmem:[%s5095_s1 + $0x40] sm:$0xff]  ;;  %307 = vst [vmem:[#allocation2 + $0x1e8] sm:$0xff] %v3872_v39  ;;  %v3018_v59 = vpack.c.bf16 %v492_v34, %v491_v32 }
  0x40   : > { %3013 = vmatpush1.bf16.msra.mxu0 %v3012_v6  ;;  %305 = vst [vmem:[#allocation2 + $0x1c8] sm:$0xff] %v3856_v25  ;;  %306 = vst [vmem:[#allocation2 + $0x1d0] sm:$0xff] %v3858_v26  ;;  %v428_v48 = vld [vmem:[%s5095_s1 + $0x48] sm:$0xff]  ;;  %v3883_v49 = vmax.f32 %v198_v37, 0.0  ;;  %v3890_v53 = vld [vmem:[%s3617_s11 + $0xf0] sm:$0xff] }
  0x41   : > { %2716 = vmatmul.mubr.f32.gmra.mrb[4].mxu1 %v3841_v16  ;;  %3014 = vmatprep.subr.bf16.mxu0 %v5102_v3  ;;  %v3886_v51 = vld [vmem:[#allocation2 + $0xa9] sm:$0xff]  ;;  %v3893_v56 = vld [vmem:[%s3617_s11 + $0xf8] sm:$0xff]  ;;  %v5099_v60 = vmax.f32 %v3890_v53, 0.0  ;;  %v3074_v9 = vpack.c.bf16 %v428_v48, %v427_v46  ;;  %v495_v20 = vld [vmem:[%s5095_s1 + $0x260] sm:$0xff] }
  0x42   : > { %3069 = vmatpush1.bf16.msra.mxu1 %v3068_v17  ;;  %2718 = vmatprep.mubr.f32.mxu1 %v3846_v21  ;;  %308 = vst [vmem:[#allocation2 + $0x1f0] sm:$0xff] %v3883_v49  ;;  %v5098_v0 = vmax.f32 %v3893_v56, 0.0  ;;  %v493_v2 = vld [vmem:[%s5095_s1 + $0x250] sm:$0xff]  ;;  %v494_v6 = vld [vmem:[%s5095_s1 + $0x258] sm:$0xff]  ;;  %v496_v23 = vld [vmem:[%s5095_s1 + $0x268] sm:$0xff] }
  0x43   : > { %3070 = vmatprep.subr.bf16.mxu1 %v5102_v3  ;;  %v3907_v7 = vld [vmem:[#allocation2 + $0xb1] sm:$0xff]  ;;  %309 = vst [vmem:[#allocation2 + $0x208] sm:$0xff] %v5099_v60  ;;  %v3914_v10 = vld [vmem:[#allocation2 + $0xc9] sm:$0xff]  ;;  %v3021_v18 = vpack.c.bf16 %v494_v6, %v493_v2  ;;  %v431_v32 = vld [vmem:[%s5095_s1 + $0x60] sm:$0xff]  ;;  %v3024_v37 = vpack.c.bf16 %v496_v23, %v495_v20 }
  0x44   : > { %3016 = vmatpush1.bf16.msra.mxu0 %v3015_v27  ;;  %310 = vst [vmem:[#allocation2 + $0x210] sm:$0xff] %v5098_v0  ;;  %v429_v11 = vld [vmem:[%s5095_s1 + $0x50] sm:$0xff]  ;;  %v430_v17 = vld [vmem:[%s5095_s1 + $0x58] sm:$0xff]  ;;  %v432_v34 = vld [vmem:[%s5095_s1 + $0x68] sm:$0xff] }
  0x45   : > { %2719 = vmatmul.mubr.f32.gmra.mrb[6].mxu1 %v3875_v42  ;;  %3017 = vmatprep.subr.bf16.mxu0 %v5102_v3  ;;  %v3931_v24 = vld [vmem:[#allocation2 + $0xd1] sm:$0xff]  ;;  %v3077_v27 = vpack.c.bf16 %v430_v17, %v429_v11  ;;  %v3934_v31 = vld [vmem:[#allocation2 + $0xe9] sm:$0xff]  ;;  %v451_v2 = vld [vmem:[%s5095_s1 + $0x100] sm:$0xff] }
  0x46   : > { %3072 = vmatpush1.bf16.msra.mxu1 %v3071_v43  ;;  %2721 = vmatprep.mubr.f32.mxu1 %v3886_v51  ;;  %5135 = vst [vmem:[#allocation6_spill] sm:$0xff] %v3931_v24  ;;  %5136 = vst [vmem:[#allocation7_spill] sm:$0xff] %v3934_v31  ;;  %v497_v43 = vld [vmem:[%s5095_s1 + $0x270] sm:$0xff]  ;;  %v498_v46 = vld [vmem:[%s5095_s1 + $0x278] sm:$0xff] }
  0x47   : > { %3073 = vmatprep.subr.bf16.mxu1 %v5102_v3  ;;  %v3951_v48 = vld [vmem:[#allocation2 + $0xf1] sm:$0xff]  ;;  %v452_v6 = vld [vmem:[%s5095_s1 + $0x108] sm:$0xff] }
  0x48   : > { %3019 = vmatpush1.bf16.msra.mxu0 %v3018_v59  ;;  %5137 = vst [vmem:[#allocation8_spill] sm:$0xff] %v3951_v48  ;;  %v3080_v59 = vpack.c.bf16 %v432_v34, %v431_v32  ;;  %v433_v11 = vld [vmem:[%s5095_s1 + $0x70] sm:$0xff]  ;;  %v434_v17 = vld [vmem:[%s5095_s1 + $0x78] sm:$0xff]  ;;  %v3109_v20 = vpack.c.bf16 %v452_v6, %v451_v2 }
  0x49   : > { %2722 = vmatmul.mubr.f32.gmra.mrb[8].mxu1 %v3907_v7  ;;  %3020 = vmatprep.subr.bf16.mxu0 %v5102_v3  ;;  %v3971_v23 = vld [vmem:[#allocation2 + $0x111] sm:$0xff]  ;;  %v4002_v0 = vld [vmem:[#allocation2 + $0x149] sm:$0xff] }
  0x4a   : > { %3075 = vmatpush1.bf16.msra.mxu1 %v3074_v9  ;;  %2724 = vmatprep.mubr.f32.mxu1 %v3914_v10  ;;  %v3960_v9 = vld [vmem:[#allocation2 + $0x109] sm:$0xff]  ;;  %5139 = vst [vmem:[#allocation10_spill] sm:$0xff] %v3971_v23  ;;  %v454_v34 = vld [vmem:[%s5095_s1 + $0x118] sm:$0xff]  ;;  %5142 = vst [vmem:[#allocation13_spill] sm:$0xff] %v4002_v0 }
  0x4b   : > { %3076 = vmatprep.subr.bf16.mxu1 %v5102_v3  ;;  %5138 = vst [vmem:[#allocation9_spill] sm:$0xff] %v3960_v9  ;;  %v453_v32 = vld [vmem:[%s5095_s1 + $0x110] sm:$0xff] }
  0x4c   : > { %3022 = vmatpush1.bf16.msra.mxu0 %v3021_v18  ;;  %v3027_v18 = vpack.c.bf16 %v498_v46, %v497_v43  ;;  %v435_v43 = vld [vmem:[%s5095_s1 + $0x80] sm:$0xff]  ;;  %v436_v46 = vld [vmem:[%s5095_s1 + $0x88] sm:$0xff]  ;;  %v3113_v2 = vpack.c.bf16 %v454_v34, %v453_v32  ;;  %v3992_v6 = vld [vmem:[#allocation2 + $0x131] sm:$0xff] }
  0x4d   : > { %2725 = vmatmul.mubr.f32.gmra.mrb[10].mxu1 %v3931_v24  ;;  %3023 = vmatprep.subr.bf16.mxu0 %v5102_v3  ;;  %5141 = vst [vmem:[#allocation12_spill] sm:$0xff] %v3992_v6  ;;  %v438_v32 = vld [vmem:[%s5095_s1 + $0x98] sm:$0xff]  ;;  %v4011_v34 = vld [vmem:[#allocation2 + $0x2f] sm:$0xff] }
  0x4e   : > { %3078 = vmatpush1.bf16.msra.mxu1 %v3077_v27  ;;  %2727 = vmatprep.mubr.f32.mxu1 %v3934_v31  ;;  %v3083_v27 = vpack.c.bf16 %v434_v17, %v433_v11  ;;  %v3086_v11 = vpack.c.bf16 %v436_v46, %v435_v43  ;;  %v455_v17 = vld [vmem:[%s5095_s1 + $0x120] sm:$0xff]  ;;  %v4015_v46 = vld [vmem:[#allocation2 + $0x151] sm:$0xff] }
  0x4f   : > { %3079 = vmatprep.subr.bf16.mxu1 %v5102_v3  ;;  %5143 = vst [vmem:[#allocation14_spill] sm:$0xff] %v4015_v46  ;;  %v457_v8 = vld [vmem:[%s5095_s1 + $0x130] sm:$0xff]  ;;  %v466_v31 = vld [vmem:[%s5095_s1 + $0x178] sm:$0xff] }
  0x50   : > { %3025 = vmatpush1.bf16.msra.mxu0 %v3024_v37  ;;  %v3980_v37 = vld [vmem:[#allocation2 + $0x129] sm:$0xff] }
  0x51   : > { %2728 = vmatmul.mubr.f32.gmra.mrb[12].mxu1 %v3951_v48  ;;  %3026 = vmatprep.subr.bf16.mxu0 %v5102_v3  ;;  %5140 = vst [vmem:[#allocation11_spill] sm:$0xff] %v3980_v37  ;;  %v464_v48 = vld [vmem:[%s5095_s1 + $0x168] sm:$0xff]  ;;  %v449_v24 = vld [vmem:[%s5095_s1 + $0xf0] sm:$0xff] }
  0x52   : > { %3081 = vmatpush1.bf16.msra.mxu1 %v3080_v59  ;;  %2730 = vmatprep.mubr.f32.mxu1 %v3960_v9  ;;  %v3988_v59 = vld [vmem:[#allocation2 + $0x27] sm:$0xff]  ;;  %v462_v9 = vld [vmem:[%s5095_s1 + $0x158] sm:$0xff] }
  0x53   : > { %3082 = vmatprep.subr.bf16.mxu1 %v5102_v3 }
  0x54   : > { %3028 = vmatpush1.bf16.msra.mxu0 %v3027_v18  ;;  %v456_v18 = vld [vmem:[%s5095_s1 + $0x128] sm:$0xff] }
  0x55   : > { %2731 = vmatmul.mubr.f32.gmra.mrb[14].mxu1 %v3971_v23  ;;  %3110 = vmatprep.subr.bf16.mxu0 %v3109_v20  ;;  %v3117_v43 = vpack.c.bf16 %v456_v18, %v455_v17  ;;  %v440_v17 = vld [vmem:[%s5095_s1 + $0xa8] sm:$0xff] }
  0x56   : > { %3084 = vmatpush1.bf16.msra.mxu1 %v3083_v27  ;;  %2733 = vmatprep.mubr.f32.mxu1 %v3980_v37  ;;  %v437_v27 = vld [vmem:[%s5095_s1 + $0x90] sm:$0xff]  ;;  %v4034_v18 = vld [vmem:[#allocation2 + $0x47] sm:$0xff] }
  0x57   : > { %580 = vmatmul.mubr.f32.vlgmr.msra.gmra.mrb[0].mxu0 %v3988_v59  ;;  %3085 = vmatprep.subr.bf16.mxu1 %v5102_v3  ;;  %v3089_v60 = vpack.c.bf16 %v438_v32, %v437_v27  ;;  %v458_v3 = vld [vmem:[%s5095_s1 + $0x138] sm:$0xff]  ;;  %v459_v37 = vld [vmem:[%s5095_s1 + $0x140] sm:$0xff]  ;;  %v460_v23 = vld [vmem:[%s5095_s1 + $0x148] sm:$0xff] }
  0x58   : > { %584 = vmatprep.mubr.f32.mxu0 %v3643_v33  ;;  %3112 = vmatpush3.bf16.msra.mxu0 %v3109_v20  ;;  %v5144_v20 = vmov 0.0|0.0   ;;  %v3121_v27 = vpack.c.bf16 %v458_v3, %v457_v8  ;;  %v4038_v32 = vld [vmem:[#allocation2 + $0x171] sm:$0xff] }
  0x59   : > { %2734 = vmatmul.mubr.f32.gmra.mrb[16].mxu1 %v3992_v6  ;;  %3114 = vmatprep.subr.bf16.mxu0 %v3113_v2  ;;  %v4025_v6 = vld [vmem:[#allocation2 + $0x169] sm:$0xff]  ;;  %5146 = vst [vmem:[#allocation16_spill] sm:$0xff] %v4038_v32  ;;  %v442_v8 = vld [vmem:[%s5095_s1 + $0xb8] sm:$0xff] }
  0x5a   : > { %3087 = vmatpush1.bf16.msra.mxu1 %v3086_v11  ;;  %2736 = vmatprep.mubr.f32.mxu1 %v4002_v0  ;;  %5145 = vst [vmem:[#allocation15_spill] sm:$0xff] %v4025_v6  ;;  %v439_v11 = vld [vmem:[%s5095_s1 + $0xa0] sm:$0xff]  ;;  %v441_v3 = vld [vmem:[%s5095_s1 + $0xb0] sm:$0xff] }
  0x5b   : > { %585 = vmatmul.mubr.f32.gmra.mrb[2].mxu0 %v4011_v34  ;;  %3088 = vmatprep.subr.bf16.mxu1 %v5144_v20  ;;  %v3092_v0 = vpack.c.bf16 %v440_v17, %v439_v11  ;;  %v3125_v11 = vpack.c.bf16 %v460_v23, %v459_v37  ;;  %v4061_v17 = vld [vmem:[#allocation2 + $0x191] sm:$0xff]  ;;  %v444_v23 = vld [vmem:[%s5095_s1 + $0xc8] sm:$0xff] }
  0x5c   : > { %589 = vmatprep.mubr.f32.mxu0 %v3648_v36  ;;  %3116 = vmatpush3.bf16.msra.mxu0 %v3113_v2  ;;  %v4048_v2 = vld [vmem:[#allocation2 + $0x189] sm:$0xff]  ;;  %5148 = vst [vmem:[#allocation18_spill] sm:$0xff] %v4061_v17 }
  0x5d   : > { %2737 = vmatmul.mubr.f32.gmra.mrb[18].mxu1 %v4015_v46  ;;  %3118 = vmatprep.subr.bf16.mxu0 %v3117_v43  ;;  %5147 = vst [vmem:[#allocation17_spill] sm:$0xff] %v4048_v2  ;;  %v461_v46 = vld [vmem:[%s5095_s1 + $0x150] sm:$0xff]  ;;  %v4080_v37 = vld [vmem:[#allocation2 + $0x67] sm:$0xff] }
  0x5e   : > { %3090 = vmatpush1.bf16.msra.mxu1 %v3089_v60  ;;  %2739 = vmatprep.mubr.f32.mxu1 %v4025_v6  ;;  %v4057_v60 = vld [vmem:[#allocation2 + $0x4f] sm:$0xff]  ;;  %v3095_v6 = vpack.c.bf16 %v442_v8, %v441_v3  ;;  %v3129_v3 = vpack.c.bf16 %v462_v9, %v461_v46 }
  0x5f   : > { %590 = vmatmul.mubr.f32.gmra.mrb[4].mxu0 %v4034_v18  ;;  %3091 = vmatprep.subr.bf16.mxu1 %v5144_v20  ;;  %v4084_v8 = vld [vmem:[#allocation2 + $0x1b1] sm:$0xff] }
  0x60   : > { %594 = vmatprep.mubr.f32.mxu0 %v3652_v38  ;;  %3120 = vmatpush3.bf16.msra.mxu0 %v3117_v43  ;;  %v4071_v43 = vld [vmem:[#allocation2 + $0x1a9] sm:$0xff]  ;;  %5150 = vst [vmem:[#allocation20_spill] sm:$0xff] %v4084_v8 }
  0x61   : > { %2740 = vmatmul.mubr.f32.gmra.mrb[20].mxu1 %v4038_v32  ;;  %3122 = vmatprep.subr.bf16.mxu0 %v3121_v27  ;;  %5149 = vst [vmem:[#allocation19_spill] sm:$0xff] %v4071_v43  ;;  %v463_v32 = vld [vmem:[%s5095_s1 + $0x160] sm:$0xff]  ;;  %v445_v9 = vld [vmem:[%s5095_s1 + $0xd0] sm:$0xff] }
  0x62   : > { %3093 = vmatpush1.bf16.msra.mxu1 %v3092_v0  ;;  %2742 = vmatprep.mubr.f32.mxu1 %v4048_v2  ;;  %v443_v0 = vld [vmem:[%s5095_s1 + $0xc0] sm:$0xff]  ;;  %v4103_v46 = vld [vmem:[#allocation2 + $0x6f] sm:$0xff] }
  0x63   : > { %595 = vmatmul.mubr.f32.gmra.mrb[6].mxu0 %v4057_v60  ;;  %3094 = vmatprep.subr.bf16.mxu1 %v5144_v20  ;;  %v3098_v2 = vpack.c.bf16 %v444_v23, %v443_v0  ;;  %v3133_v0 = vpack.c.bf16 %v464_v48, %v463_v32  ;;  %v4107_v23 = vld [vmem:[#allocation2 + $0x1d1] sm:$0xff]  ;;  %v447_v48 = vld [vmem:[%s5095_s1 + $0xe0] sm:$0xff]  ;;  %v448_v32 = vld [vmem:[%s5095_s1 + $0xe8] sm:$0xff] }
  0x64   : > { %599 = vmatprep.mubr.f32.mxu0 %v3663_v44  ;;  %3124 = vmatpush3.bf16.msra.mxu0 %v3121_v27  ;;  %v4094_v27 = vld [vmem:[#allocation2 + $0x1c9] sm:$0xff] }
  0x65   : > { %2743 = vmatmul.mubr.f32.gmra.mrb[22].mxu1 %v4061_v17  ;;  %3126 = vmatprep.subr.bf16.mxu0 %v3125_v11  ;;  %5151 = vst [vmem:[#allocation21_spill] sm:$0xff] %v4094_v27  ;;  %v465_v17 = vld [vmem:[%s5095_s1 + $0x170] sm:$0xff] }
  0x66   : > { %3096 = vmatpush1.bf16.msra.mxu1 %v3095_v6  ;;  %2745 = vmatprep.mubr.f32.mxu1 %v4071_v43  ;;  %v446_v6 = vld [vmem:[%s5095_s1 + $0xd8] sm:$0xff] }
  0x67   : > { %600 = vmatmul.mubr.f32.gmra.mrb[8].mxu0 %v4080_v37  ;;  %3097 = vmatprep.subr.bf16.mxu1 %v5144_v20  ;;  %v3101_v43 = vpack.c.bf16 %v446_v6, %v445_v9  ;;  %v3137_v9 = vpack.c.bf16 %v466_v31, %v465_v17  ;;  %v4130_v6 = vld [vmem:[#allocation2 + $0x1f1] sm:$0xff] }
  0x68   : > { %604 = vmatprep.mubr.f32.mxu0 %v3673_v47  ;;  %3128 = vmatpush3.bf16.msra.mxu0 %v3125_v11  ;;  %v4117_v11 = vld [vmem:[#allocation2 + $0x1e9] sm:$0xff]  ;;  %5153 = vst [vmem:[#allocation23_spill] sm:$0xff] %v4130_v6  ;;  %v416_v17 = vld [vmem:[#allocation2 + $0x211] sm:$0xff] }
  0x69   : > { %2746 = vmatmul.mubr.f32.gmra.mrb[24].mxu1 %v4084_v8  ;;  %3130 = vmatprep.subr.bf16.mxu0 %v3129_v3  ;;  %5152 = vst [vmem:[#allocation22_spill] sm:$0xff] %v4117_v11  ;;  %v415_v8 = vld [vmem:[#allocation2 + $0x209] sm:$0xff] }
  0x6a   : > { %3099 = vmatpush1.bf16.msra.mxu1 %v3098_v2  ;;  %2748 = vmatprep.mubr.f32.mxu1 %v4094_v27  ;;  %v4126_v2 = vld [vmem:[#allocation2 + $0x87] sm:$0xff]  ;;  %v3104_v27 = vpack.c.bf16 %v448_v32, %v447_v48  ;;  %v4141_v31 = vld [vmem:[#allocation2 + $0x8f] sm:$0xff] }
  0x6b   : > { %605 = vmatmul.mubr.f32.gmra.mrb[10].mxu0 %v4103_v46  ;;  %3100 = vmatprep.subr.bf16.mxu1 %v5144_v20  ;;  %v1415_v48 = vld [vmem:[%s5095_s1 + $0x300] sm:$0xff]  ;;  %v1416_v32 = vld [vmem:[%s5095_s1 + $0x308] sm:$0xff] }
  0x6c   : > { %609 = vmatprep.mubr.f32.mxu0 %v3678_v50  ;;  %3132 = vmatpush3.bf16.msra.mxu0 %v3129_v3  ;;  %v450_v3 = vld [vmem:[%s5095_s1 + $0xf8] sm:$0xff] }
  0x6d   : > { %2749 = vmatmul.mubr.f32.gmra.mrb[26].mxu1 %v4107_v23  ;;  %3134 = vmatprep.subr.bf16.mxu0 %v3133_v0 }
  0x6e   : > { %3102 = vmatpush1.bf16.msra.mxu1 %v3101_v43  ;;  %2751 = vmatprep.mubr.f32.mxu1 %v4117_v11  ;;  %v3107_v43 = vpack.c.bf16 %v450_v3, %v449_v24  ;;  %v1447_v24 = vld [vmem:[%s5095_s1 + $0x400] sm:$0xff] }
  0x6f   : > { %610 = vmatmul.mubr.f32.gmra.mrb[12].mxu0 %v4126_v2  ;;  %3103 = vmatprep.subr.bf16.mxu1 %v5144_v20  ;;  %v311_v3 = vld [vmem:[#allocation2 + $0x7] sm:$0xff] }
  0x70   : > { %614 = vmatprep.mubr.f32.mxu0 %v3681_v52  ;;  %3136 = vmatpush3.bf16.msra.mxu0 %v3133_v0  ;;  %v4153_v0 = vld [vmem:[#allocation2 + $0xa7] sm:$0xff] }
  0x71   : > { %2752 = vmatmul.mubr.f32.gmra.mrb[28].mxu1 %v4130_v6  ;;  %3138 = vmatprep.subr.bf16.mxu0 %v3137_v9  ;;  %v3142_v6 = vpack.c.bf16 %v1416_v32, %v1415_v48  ;;  %v312_v48 = vld [vmem:[#allocation2 + $0xf] sm:$0xff] }
  0x72   : > { %3105 = vmatpush1.bf16.msra.mxu1 %v3104_v27  ;;  %2754 = vmatprep.mubr.f32.mxu1 %v415_v8  ;;  %v1448_v8 = vld [vmem:[%s5095_s1 + $0x408] sm:$0xff]  ;;  %v5154_v27 = vmov 0.0  }
  0x73   : > { %615 = vmatmul.mubr.f32.gmra.mrb[14].mxu0 %v4141_v31  ;;  %3106 = vmatprep.subr.bf16.mxu1 %v5144_v20  ;;  %v4162_v11 = vpack.c.bf16 %v1448_v8, %v1447_v24  ;;  %v1419_v24 = vld [vmem:[%s5095_s1 + $0x320] sm:$0xff]  ;;  %v1420_v8 = vld [vmem:[%s5095_s1 + $0x328] sm:$0xff] }
  0x74   : > { %619 = vmatprep.mubr.f32.mxu0 %v3692_v58  ;;  %3140 = vmatpush3.bf16.msra.mxu0 %v3137_v9  ;;  %v1417_v9 = vld [vmem:[%s5095_s1 + $0x310] sm:$0xff] }
  0x75   : > { %2755 = vmatmul.mubr.f32.gmra.mrb[30].mxu1 %v416_v17  ;;  %v1418_v17 = vld [vmem:[%s5095_s1 + $0x318] sm:$0xff]  ;;  %3190 = vmatprep.subr.bf16.mxu0 %v4162_v11 }
  0x76   : > { %3108 = vmatpush1.bf16.msra.mxu1 %v3107_v43  ;;  %1029 = vmatprep.mubr.f32.mxu1 %v5154_v27  ;;  %v4173_v43 = vld [vmem:[#allocation2 + $0xaf] sm:$0xff]  ;;  %v3145_v32 = vpack.c.bf16 %v1418_v17, %v1417_v9  ;;  %v1422_v9 = vld [vmem:[%s5095_s1 + $0x338] sm:$0xff] }
  0x77   : > { %620 = vmatmul.mubr.f32.gmra.mrb[16].mxu0 %v4153_v0  ;;  %3141 = vmatprep.subr.bf16.mxu1 %v5144_v20  ;;  %v4198_v17 = vld [vmem:[#allocation2 + $0xcf] sm:$0xff] }
  0x78   : > { %624 = vmatprep.mubr.f32.mxu0 %v3702_v61 }
  0x79   : > { %1030 = vmatmul.mubr.f32.vlgmr.msra.gmra.mrb[32].mxu1 %v311_v3  ;;  %v4186_v3 = vld [vmem:[#allocation2 + $0xc7] sm:$0xff] }
  0x7a   : > { %3143 = vmatpush1.bf16.msra.mxu1 %v3142_v6  ;;  %1034 = vmatprep.mubr.f32.mxu1 %v5154_v27  ;;  %v3148_v6 = vpack.c.bf16 %v1420_v8, %v1419_v24  ;;  %v1421_v27 = vld [vmem:[%s5095_s1 + $0x330] sm:$0xff]  ;;  %v4211_v24 = vld [vmem:[#allocation2 + $0xe7] sm:$0xff]  ;;  %v1426_v8 = vld [vmem:[%s5095_s1 + $0x358] sm:$0xff] }
  0x7b   : > { %625 = vmatmul.mubr.f32.gmra.mrb[18].mxu0 %v4173_v43  ;;  %3144 = vmatprep.subr.bf16.mxu1 %v5144_v20 }
  0x7c   : > { %629 = vmatprep.mubr.f32.mxu0 %v3707_v1 }
  0x7d   : > { %1035 = vmatmul.mubr.f32.gmra.mrb[34].mxu1 %v312_v48  ;;  %v1423_v48 = vld [vmem:[%s5095_s1 + $0x340] sm:$0xff] }
  0x7e   : > { %1039 = vmatprep.mubr.f32.mxu1 %v3634_v30  ;;  %3146 = vmatpush1.bf16.msra.mxu1 %v3145_v32  ;;  %v3151_v30 = vpack.c.bf16 %v1422_v9, %v1421_v27  ;;  %v1424_v32 = vld [vmem:[%s5095_s1 + $0x348] sm:$0xff] }
  0x7f   : > { %630 = vmatmul.mubr.f32.gmra.mrb[20].mxu0 %v4186_v3  ;;  %3147 = vmatprep.subr.bf16.mxu1 %v5144_v20  ;;  %v1428_v27 = vld [vmem:[%s5095_s1 + $0x368] sm:$0xff] }
  0x80   : > { %634 = vmatprep.mubr.f32.mxu0 %v3710_v4  ;;  %v4237_v9 = vld [vmem:[#allocation2 + $0x107] sm:$0xff] }
  0x81   : > { %1040 = vmatmul.mubr.f32.gmra.mrb[36].mxu1 %v3988_v59  ;;  %v1425_v59 = vld [vmem:[%s5095_s1 + $0x350] sm:$0xff] }
  0x82   : > { %1044 = vmatprep.mubr.f32.mxu1 %v3643_v33  ;;  %3149 = vmatpush1.bf16.msra.mxu1 %v3148_v6  ;;  %v3154_v33 = vpack.c.bf16 %v1424_v32, %v1423_v48  ;;  %v4224_v6 = vld [vmem:[#allocation2 + $0xef] sm:$0xff]  ;;  %v1430_v48 = vld [vmem:[%s5095_s1 + $0x378] sm:$0xff] }
  0x83   : > { %635 = vmatmul.mubr.f32.gmra.mrb[22].mxu0 %v4198_v17  ;;  %3150 = vmatprep.subr.bf16.mxu1 %v5144_v20  ;;  %v4250_v32 = vld [vmem:[#allocation2 + $0x10f] sm:$0xff] }
  0x84   : > { %639 = vmatprep.mubr.f32.mxu0 %v3729_v13 }
  0x85   : > { %1045 = vmatmul.mubr.f32.gmra.mrb[38].mxu1 %v4011_v34  ;;  %v1427_v34 = vld [vmem:[%s5095_s1 + $0x360] sm:$0xff] }
  0x86   : > { %1049 = vmatprep.mubr.f32.mxu1 %v3648_v36  ;;  %3152 = vmatpush1.bf16.msra.mxu1 %v3151_v30  ;;  %v3157_v36 = vpack.c.bf16 %v1426_v8, %v1425_v59  ;;  %v1429_v30 = vld [vmem:[%s5095_s1 + $0x370] sm:$0xff]  ;;  %v1432_v59 = vld [vmem:[%s5095_s1 + $0x388] sm:$0xff] }
  0x87   : > { %640 = vmatmul.mubr.f32.gmra.mrb[24].mxu0 %v4211_v24  ;;  %3153 = vmatprep.subr.bf16.mxu1 %v5144_v20  ;;  %v4263_v8 = vld [vmem:[#allocation2 + $0x127] sm:$0xff] }
  0x88   : > { %644 = vmatprep.mubr.f32.mxu0 %v3731_v14 }
  0x89   : > { %1050 = vmatmul.mubr.f32.gmra.mrb[40].mxu1 %v4034_v18 }
  0x8a   : > { %1054 = vmatprep.mubr.f32.mxu1 %v3652_v38  ;;  %3155 = vmatpush1.bf16.msra.mxu1 %v3154_v33  ;;  %v3160_v38 = vpack.c.bf16 %v1428_v27, %v1427_v34  ;;  %v1431_v33 = vld [vmem:[%s5095_s1 + $0x380] sm:$0xff]  ;;  %v1434_v34 = vld [vmem:[%s5095_s1 + $0x398] sm:$0xff]  ;;  %v4276_v27 = vld [vmem:[#allocation2 + $0x12f] sm:$0xff] }
  0x8b   : > { %645 = vmatmul.mubr.f32.gmra.mrb[26].mxu0 %v4224_v6  ;;  %3156 = vmatprep.subr.bf16.mxu1 %v5144_v20 }
  0x8c   : > { %649 = vmatprep.mubr.f32.mxu0 %v3737_v19 }
  0x8d   : > { %1055 = vmatmul.mubr.f32.gmra.mrb[42].mxu1 %v4057_v60 }
  0x8e   : > { %1059 = vmatprep.mubr.f32.mxu1 %v3663_v44  ;;  %3158 = vmatpush1.bf16.msra.mxu1 %v3157_v36  ;;  %v3163_v44 = vpack.c.bf16 %v1430_v48, %v1429_v30  ;;  %v1433_v36 = vld [vmem:[%s5095_s1 + $0x390] sm:$0xff]  ;;  %v1436_v30 = vld [vmem:[%s5095_s1 + $0x3a8] sm:$0xff] }
  0x8f   : > { %650 = vmatmul.mubr.f32.gmra.mrb[28].mxu0 %v4237_v9  ;;  %3159 = vmatprep.subr.bf16.mxu1 %v5144_v20  ;;  %v4289_v48 = vld [vmem:[#allocation2 + $0x147] sm:$0xff] }
  0x90   : > { %654 = vmatprep.mubr.f32.mxu0 %v3746_v22 }
  0x91   : > { %1060 = vmatmul.mubr.f32.gmra.mrb[44].mxu1 %v4080_v37 }
  0x92   : > { %1064 = vmatprep.mubr.f32.mxu1 %v3673_v47  ;;  %3161 = vmatpush1.bf16.msra.mxu1 %v3160_v38  ;;  %v3166_v47 = vpack.c.bf16 %v1432_v59, %v1431_v33  ;;  %v1435_v38 = vld [vmem:[%s5095_s1 + $0x3a0] sm:$0xff]  ;;  %v1438_v33 = vld [vmem:[%s5095_s1 + $0x3b8] sm:$0xff]  ;;  %v4302_v59 = vld [vmem:[#allocation2 + $0x14f] sm:$0xff] }
  0x93   : > { %655 = vmatmul.mubr.f32.gmra.mrb[30].mxu0 %v4250_v32  ;;  %3162 = vmatprep.subr.bf16.mxu1 %v5144_v20 }
  0x94   : > { %659 = vmatprep.mubr.f32.mxu0 %v3758_v28 }
  0x95   : > { %1065 = vmatmul.mubr.f32.gmra.mrb[46].mxu1 %v4103_v46 }
  0x96   : > { %1069 = vmatprep.mubr.f32.mxu1 %v3678_v50  ;;  %3164 = vmatpush1.bf16.msra.mxu1 %v3163_v44  ;;  %v3169_v50 = vpack.c.bf16 %v1434_v34, %v1433_v36  ;;  %v1437_v44 = vld [vmem:[%s5095_s1 + $0x3b0] sm:$0xff]  ;;  %v1440_v36 = vld [vmem:[%s5095_s1 + $0x3c8] sm:$0xff] }
  0x97   : > { %660 = vmatmul.mubr.f32.gmra.mrb[32].mxu0 %v4263_v8  ;;  %3165 = vmatprep.subr.bf16.mxu1 %v5144_v20  ;;  %v4315_v34 = vld [vmem:[#allocation2 + $0x167] sm:$0xff] }
  0x98   : > { %664 = vmatprep.mubr.f32.mxu0 %v3760_v29 }
  0x99   : > { %1070 = vmatmul.mubr.f32.gmra.mrb[48].mxu1 %v4126_v2 }
  0x9a   : > { %1074 = vmatprep.mubr.f32.mxu1 %v3681_v52  ;;  %3167 = vmatpush1.bf16.msra.mxu1 %v3166_v47  ;;  %v3172_v52 = vpack.c.bf16 %v1436_v30, %v1435_v38  ;;  %v1439_v47 = vld [vmem:[%s5095_s1 + $0x3c0] sm:$0xff]  ;;  %v1442_v38 = vld [vmem:[%s5095_s1 + $0x3d8] sm:$0xff]  ;;  %v4328_v30 = vld [vmem:[#allocation2 + $0x16f] sm:$0xff] }
  0x9b   : > { %665 = vmatmul.mubr.f32.gmra.mrb[34].mxu0 %v4276_v27  ;;  %3168 = vmatprep.subr.bf16.mxu1 %v5144_v20 }
  0x9c   : > { %669 = vmatprep.mubr.f32.mxu0 %v3775_v40 }
  0x9d   : > { %1075 = vmatmul.mubr.f32.gmra.mrb[50].mxu1 %v4141_v31 }
  0x9e   : > { %1079 = vmatprep.mubr.f32.mxu1 %v3692_v58  ;;  %3170 = vmatpush1.bf16.msra.mxu1 %v3169_v50  ;;  %v3175_v58 = vpack.c.bf16 %v1438_v33, %v1437_v44  ;;  %v1441_v50 = vld [vmem:[%s5095_s1 + $0x3d0] sm:$0xff]  ;;  %v1444_v44 = vld [vmem:[%s5095_s1 + $0x3e8] sm:$0xff] }
  0x9f   : > { %670 = vmatmul.mubr.f32.gmra.mrb[36].mxu0 %v4289_v48  ;;  %3171 = vmatprep.subr.bf16.mxu1 %v5144_v20  ;;  %v4341_v33 = vld [vmem:[#allocation2 + $0x187] sm:$0xff] }
  0xa0   : > { %674 = vmatprep.mubr.f32.mxu0 %v3786_v45 }
  0xa1   : > { %1080 = vmatmul.mubr.f32.gmra.mrb[52].mxu1 %v4153_v0 }
  0xa2   : > { %1084 = vmatprep.mubr.f32.mxu1 %v3702_v61  ;;  %3173 = vmatpush1.bf16.msra.mxu1 %v3172_v52  ;;  %v3178_v61 = vpack.c.bf16 %v1440_v36, %v1439_v47  ;;  %v1443_v52 = vld [vmem:[%s5095_s1 + $0x3e0] sm:$0xff]  ;;  %v1446_v47 = vld [vmem:[%s5095_s1 + $0x3f8] sm:$0xff]  ;;  %v4354_v36 = vld [vmem:[#allocation2 + $0x18f] sm:$0xff] }
  0xa3   : > { %675 = vmatmul.mubr.f32.gmra.mrb[38].mxu0 %v4302_v59  ;;  %3174 = vmatprep.subr.bf16.mxu1 %v5144_v20 }
  0xa4   : > { %679 = vmatprep.mubr.f32.mxu0 %v3800_v54 }
  0xa5   : > { %1085 = vmatmul.mubr.f32.gmra.mrb[54].mxu1 %v4173_v43 }
  0xa6   : > { %1089 = vmatprep.mubr.f32.mxu1 %v3707_v1  ;;  %3176 = vmatpush1.bf16.msra.mxu1 %v3175_v58  ;;  %v3181_v1 = vpack.c.bf16 %v1442_v38, %v1441_v50  ;;  %v1445_v58 = vld [vmem:[%s5095_s1 + $0x3f0] sm:$0xff]  ;;  %v4399_v50 = vld [vmem:[#allocation2 + $0x207] sm:$0xff] }
  0xa7   : > { %680 = vmatmul.mubr.f32.gmra.mrb[40].mxu0 %v4315_v34  ;;  %3177 = vmatprep.subr.bf16.mxu1 %v5144_v20  ;;  %v4406_v38 = vld [vmem:[#allocation2 + $0x20f] sm:$0xff] }
  0xa8   : > { %684 = vmatprep.mubr.f32.mxu0 %v3802_v55 }
  0xa9   : > { %1090 = vmatmul.mubr.f32.gmra.mrb[56].mxu1 %v4186_v3 }
  0xaa   : > { %1094 = vmatprep.mubr.f32.mxu1 %v3710_v4  ;;  %3179 = vmatpush1.bf16.msra.mxu1 %v3178_v61  ;;  %v3184_v4 = vpack.c.bf16 %v1444_v44, %v1443_v52  ;;  %v4361_v61 = vld [vmem:[#allocation2 + $0x1a7] sm:$0xff] }
  0xab   : > { %685 = vmatmul.mubr.f32.gmra.mrb[42].mxu0 %v4328_v30  ;;  %3180 = vmatprep.subr.bf16.mxu1 %v5144_v20  ;;  %v1452_v52 = vld [vmem:[%s5095_s1 + $0x428] sm:$0xff] }
  0xac   : > { %689 = vmatprep.mubr.f32.mxu0 %v3809_v62  ;;  %v3296_v44 = vld [vmem:[#allocation2 + $0x29] sm:$0xff] }
  0xad   : > { %1095 = vmatmul.mubr.f32.gmra.mrb[58].mxu1 %v4198_v17 }
  0xae   : > { %1099 = vmatprep.mubr.f32.mxu1 %v3729_v13  ;;  %3182 = vmatpush1.bf16.msra.mxu1 %v3181_v1  ;;  %v3187_v13 = vpack.c.bf16 %v1446_v47, %v1445_v58  ;;  %v1454_v58 = vld [vmem:[%s5095_s1 + $0x438] sm:$0xff] }
  0xaf   : > { %690 = vmatmul.mubr.f32.gmra.mrb[44].mxu0 %v4341_v33  ;;  %3183 = vmatprep.subr.bf16.mxu1 %v5144_v20 }
  0xb0   : > { %694 = vmatprep.mubr.f32.mxu0 %v3822_v5 }
  0xb1   : > { %1100 = vmatmul.mubr.f32.gmra.mrb[60].mxu1 %v4211_v24 }
  0xb2   : > { %1104 = vmatprep.mubr.f32.mxu1 %v3731_v14  ;;  %3185 = vmatpush1.bf16.msra.mxu1 %v3184_v4  ;;  %v4368_v14 = vld [vmem:[#allocation2 + $0x1af] sm:$0xff] }
  0xb3   : > { %695 = vmatmul.mubr.f32.gmra.mrb[46].mxu0 %v4354_v36  ;;  %3186 = vmatprep.subr.bf16.mxu1 %v5144_v20  ;;  %v4374_v20 = vld [vmem:[#allocation2 + $0x1c7] sm:$0xff] }
  0xb4   : > { %699 = vmatprep.mubr.f32.mxu0 %v3836_v12 }
  0xb5   : > { %1105 = vmatmul.mubr.f32.gmra.mrb[62].mxu1 %v4224_v6 }
  0xb6   : > { %1109 = vmatprep.mubr.f32.mxu1 %v3737_v19  ;;  %3188 = vmatpush1.bf16.msra.mxu1 %v3187_v13  ;;  %v4380_v19 = vld [vmem:[#allocation2 + $0x1cf] sm:$0xff] }
  0xb7   : > { %700 = vmatmul.mubr.f32.gmra.mrb[48].mxu0 %v4361_v61  ;;  %3237 = vmatprep.subr.bf16.mxu1 %v4162_v11  ;;  %v5158_v13 = vld [vmem:[#allocation7_spill] sm:$0xff] }
  0xb8   : > { %704 = vmatprep.mubr.f32.mxu0 %v3838_v15 }
  0xb9   : > { %1110 = vmatmul.mubr.f32.gmra.mrb[64].mxu1 %v4237_v9 }
  0xba   : > { %1114 = vmatprep.mubr.f32.mxu1 %v3746_v22  ;;  %v4386_v22 = vld [vmem:[#allocation2 + $0x1e7] sm:$0xff] }
  0xbb   : > { %705 = vmatmul.mubr.f32.gmra.mrb[50].mxu0 %v4368_v14 }
  0xbc   : > { %709 = vmatprep.mubr.f32.mxu0 %v3856_v25 }
  0xbd   : > { %1115 = vmatmul.mubr.f32.gmra.mrb[66].mxu1 %v4250_v32 }
  0xbe   : > { %1119 = vmatprep.mubr.f32.mxu1 %v3758_v28  ;;  %v4392_v28 = vld [vmem:[#allocation2 + $0x1ef] sm:$0xff] }
  0xbf   : > { %710 = vmatmul.mubr.f32.gmra.mrb[52].mxu0 %v4374_v20 }
  0xc0   : > { %714 = vmatprep.mubr.f32.mxu0 %v3858_v26 }
  0xc1   : > { %1120 = vmatmul.mubr.f32.gmra.mrb[68].mxu1 %v4263_v8 }
  0xc2   : > { %1124 = vmatprep.mubr.f32.mxu1 %v3760_v29  ;;  %v5155_v29 = vmax.f32 %v3890_v53, 0.0  ;;  %v1449_v53 = vld [vmem:[%s5095_s1 + $0x410] sm:$0xff] }
  0xc3   : > { %715 = vmatmul.mubr.f32.gmra.mrb[54].mxu0 %v4380_v19 }
  0xc4   : > { %719 = vmatprep.mubr.f32.mxu0 %v3872_v39 }
  0xc5   : > { %1125 = vmatmul.mubr.f32.gmra.mrb[70].mxu1 %v4276_v27 }
  0xc6   : > { %1129 = vmatprep.mubr.f32.mxu1 %v3775_v40  ;;  %v5156_v40 = vmax.f32 %v3893_v56, 0.0  ;;  %v384_v56 = vld [vmem:[#allocation2 + $0x11] sm:$0xff] }
  0xc7   : > { %720 = vmatmul.mubr.f32.gmra.mrb[56].mxu0 %v4386_v22 }
  0xc8   : > { %724 = vmatprep.mubr.f32.mxu0 %v3883_v49 }
  0xc9   : > { %1130 = vmatmul.mubr.f32.gmra.mrb[72].mxu1 %v4289_v48 }
  0xca   : > { %1134 = vmatprep.mubr.f32.mxu1 %v3786_v45  ;;  %v383_v45 = vld [vmem:[#allocation2 + $0x9] sm:$0xff] }
  0xcb   : > { %725 = vmatmul.mubr.f32.gmra.mrb[58].mxu0 %v4392_v28 }
  0xcc   : > { %729 = vmatprep.mubr.f32.mxu0 %v5155_v29  ;;  %v5161_v29 = vld [vmem:[#allocation10_spill] sm:$0xff] }
  0xcd   : > { %1135 = vmatmul.mubr.f32.gmra.mrb[74].mxu1 %v4302_v59 }
  0xce   : > { %1139 = vmatprep.mubr.f32.mxu1 %v3800_v54  ;;  %v1450_v54 = vld [vmem:[%s5095_s1 + $0x418] sm:$0xff] }
  0xcf   : > { %730 = vmatmul.mubr.f32.gmra.mrb[60].mxu0 %v4399_v50  ;;  %v4418_v1 = vpack.c.bf16 %v1450_v54, %v1449_v53  ;;  %v5164_v53 = vld [vmem:[#allocation13_spill] sm:$0xff]  ;;  %v3299_v54 = vld [vmem:[#allocation2 + $0x68] sm:$0xff] }
  0xd0   : > { %734 = vmatprep.mubr.f32.mxu0 %v5156_v40  ;;  %v5162_v40 = vld [vmem:[#allocation11_spill] sm:$0xff] }
  0xd1   : > { %1140 = vmatmul.mubr.f32.gmra.mrb[76].mxu1 %v4315_v34 }
  0xd2   : > { %1144 = vmatprep.mubr.f32.mxu1 %v3802_v55  ;;  %v1451_v55 = vld [vmem:[%s5095_s1 + $0x420] sm:$0xff] }
  0xd3   : > { %735 = vmatmul.mubr.f32.gmra.mrb[62].mxu0 %v4406_v38  ;;  %v4430_v4 = vpack.c.bf16 %v1452_v52, %v1451_v55  ;;  %v5167_v55 = vld [vmem:[#allocation16_spill] sm:$0xff]  ;;  %v5169_v52 = vld [vmem:[#allocation18_spill] sm:$0xff] }
  0xd4   : > { %2789 = vmatprep.mubr.f32.mxu0 %v383_v45  ;;  %v3298_v45 = vld [vmem:[#allocation2 + $0x50] sm:$0xff] }
  0xd5   : > { %1145 = vmatmul.mubr.f32.gmra.mrb[78].mxu1 %v4328_v30 }
  0xd6   : > { %1149 = vmatprep.mubr.f32.mxu1 %v3809_v62  ;;  %v1453_v62 = vld [vmem:[%s5095_s1 + $0x430] sm:$0xff] }
  0xd7   : > { %2790 = vmatmul.mubr.f32.vlgmr.msra.gmra.mrb[64].mxu0 %v384_v56  ;;  %v4444_v47 = vpack.c.bf16 %v1454_v58, %v1453_v62  ;;  %v5165_v56 = vld [vmem:[#allocation14_spill] sm:$0xff]  ;;  %v5172_v62 = vld [vmem:[#allocation21_spill] sm:$0xff] }
  0xd8   : > { %2792 = vmatprep.mubr.f32.mxu0 %v3296_v44  ;;  %3192 = vmatpush3.bf16.msra.mxu0 %v4162_v11  ;;  %v3302_v44 = vld [vmem:[#allocation2 + $0x90] sm:$0xff] }
  0xd9   : > { %1150 = vmatmul.mubr.f32.gmra.mrb[80].mxu1 %v4341_v33  ;;  %3194 = vmatprep.subr.bf16.mxu0 %v4418_v1 }
  0xda   : > { %1154 = vmatprep.mubr.f32.mxu1 %v3822_v5  ;;  %v1455_v5 = vld [vmem:[%s5095_s1 + $0x440] sm:$0xff] }
  0xdb   : > { %2793 = vmatmul.mubr.f32.gmra.mrb[66].mxu0 %v3770_v35  ;;  %v1456_v35 = vld [vmem:[%s5095_s1 + $0x448] sm:$0xff] }
  0xdc   : > { %2795 = vmatprep.mubr.f32.mxu0 %v3778_v41  ;;  %3196 = vmatpush3.bf16.msra.mxu0 %v4418_v1  ;;  %v4458_v41 = vpack.c.bf16 %v1456_v35, %v1455_v5  ;;  %v5173_v5 = vld [vmem:[#allocation22_spill] sm:$0xff] }
  0xdd   : > { %1155 = vmatmul.mubr.f32.gmra.mrb[82].mxu1 %v4354_v36  ;;  %3198 = vmatprep.subr.bf16.mxu0 %v4430_v4 }
  0xde   : > { %1159 = vmatprep.mubr.f32.mxu1 %v3836_v12  ;;  %v1457_v12 = vld [vmem:[%s5095_s1 + $0x450] sm:$0xff] }
  0xdf   : > { %2796 = vmatmul.mubr.f32.gmra.mrb[68].mxu0 %v3806_v57  ;;  %v1458_v57 = vld [vmem:[%s5095_s1 + $0x458] sm:$0xff] }
  0xe0   : > { %2798 = vmatprep.mubr.f32.mxu0 %v3812_v63  ;;  %3200 = vmatpush3.bf16.msra.mxu0 %v4430_v4  ;;  %v4472_v63 = vpack.c.bf16 %v1458_v57, %v1457_v12 }
  0xe1   : > { %1160 = vmatmul.mubr.f32.gmra.mrb[84].mxu1 %v4361_v61  ;;  %3202 = vmatprep.subr.bf16.mxu0 %v4444_v47 }
  0xe2   : > { %1164 = vmatprep.mubr.f32.mxu1 %v3838_v15  ;;  %v1459_v15 = vld [vmem:[%s5095_s1 + $0x460] sm:$0xff] }
  0xe3   : > { %2799 = vmatmul.mubr.f32.gmra.mrb[70].mxu0 %v3841_v16  ;;  %v1460_v16 = vld [vmem:[%s5095_s1 + $0x468] sm:$0xff] }
  0xe4   : > { %2801 = vmatprep.mubr.f32.mxu0 %v3846_v21  ;;  %3204 = vmatpush3.bf16.msra.mxu0 %v4444_v47  ;;  %v4486_v21 = vpack.c.bf16 %v1460_v16, %v1459_v15  ;;  %v3308_v16 = vld [vmem:[#allocation2 + $0x69] sm:$0xff] }
  0xe5   : > { %1165 = vmatmul.mubr.f32.gmra.mrb[86].mxu1 %v4368_v14  ;;  %3206 = vmatprep.subr.bf16.mxu0 %v4458_v41 }
  0xe6   : > { %1169 = vmatprep.mubr.f32.mxu1 %v3856_v25  ;;  %v1461_v25 = vld [vmem:[%s5095_s1 + $0x470] sm:$0xff] }
  0xe7   : > { %2802 = vmatmul.mubr.f32.gmra.mrb[72].mxu0 %v3875_v42  ;;  %v1462_v42 = vld [vmem:[%s5095_s1 + $0x478] sm:$0xff] }
  0xe8   : > { %2804 = vmatprep.mubr.f32.mxu0 %v3886_v51  ;;  %3208 = vmatpush3.bf16.msra.mxu0 %v4458_v41  ;;  %v4500_v51 = vpack.c.bf16 %v1462_v42, %v1461_v25  ;;  %v3309_v25 = vld [vmem:[#allocation2 + $0xd0] sm:$0xff] }
  0xe9   : > { %1170 = vmatmul.mubr.f32.gmra.mrb[88].mxu1 %v4374_v20  ;;  %3210 = vmatprep.subr.bf16.mxu0 %v4472_v63  ;;  %v3310_v42 = vld [vmem:[#allocation2 + $0x71] sm:$0xff] }
  0xea   : > { %1174 = vmatprep.mubr.f32.mxu1 %v3858_v26  ;;  %v5157_v26 = vld [vmem:[#allocation6_spill] sm:$0xff] }
  0xeb   : > { %2805 = vmatmul.mubr.f32.gmra.mrb[74].mxu0 %v3907_v7  ;;  %v5159_v7 = vld [vmem:[#allocation8_spill] sm:$0xff] }
  0xec   : > { %2807 = vmatprep.mubr.f32.mxu0 %v3914_v10  ;;  %3212 = vmatpush3.bf16.msra.mxu0 %v4472_v63  ;;  %v5160_v10 = vld [vmem:[#allocation9_spill] sm:$0xff] }
  0xed   : > { %1175 = vmatmul.mubr.f32.gmra.mrb[90].mxu1 %v4380_v19  ;;  %3214 = vmatprep.subr.bf16.mxu0 %v4486_v21 }
  0xee   : > { %1179 = vmatprep.mubr.f32.mxu1 %v3872_v39  ;;  %v3297_v39 = vld [vmem:[#allocation2 + $0x48] sm:$0xff] }
  0xef   : > { %2808 = vmatmul.mubr.f32.gmra.mrb[76].mxu0 %v5157_v26 }
  0xf0   : > { %2810 = vmatprep.mubr.f32.mxu0 %v5158_v13  ;;  %3216 = vmatpush3.bf16.msra.mxu0 %v4486_v21 }
  0xf1   : > { %1180 = vmatmul.mubr.f32.gmra.mrb[92].mxu1 %v4386_v22  ;;  %3218 = vmatprep.subr.bf16.mxu0 %v4500_v51 }
  0xf2   : > { %1184 = vmatprep.mubr.f32.mxu1 %v3883_v49  ;;  %v5163_v49 = vld [vmem:[#allocation12_spill] sm:$0xff] }
  0xf3   : > { %2811 = vmatmul.mubr.f32.gmra.mrb[78].mxu0 %v5159_v7  ;;  %v3313_v7 = vld [vmem:[#allocation2 + $0x91] sm:$0xff] }
  0xf4   : > { %2813 = vmatprep.mubr.f32.mxu0 %v5160_v10  ;;  %3220 = vmatpush3.bf16.msra.mxu0 %v4500_v51 }
  0xf5   : > { %1185 = vmatmul.mubr.f32.gmra.mrb[94].mxu1 %v4392_v28 }
  0xf6   : > { %1527 = vmatprep.mubr.f32.mxu1 %v3297_v39  ;;  %v3314_v39 = vld [vmem:[#allocation2 + $0xa9] sm:$0xff] }
  0xf7   : > { %2814 = vmatmul.mubr.f32.gmra.mrb[80].mxu0 %v5161_v29 }
  0xf8   : > { %2816 = vmatprep.mubr.f32.mxu0 %v5162_v40 }
  0xf9   : > { %1528 = vmatmul.mubr.f32.vlgmr.msra.gmra.mrb[96].mxu1 %v4034_v18  ;;  %v5166_v18 = vld [vmem:[#allocation15_spill] sm:$0xff] }
  0xfa   : > { %3245 = vmatpush3.bf16.msra.mxu1 %v4162_v11  ;;  %1532 = vmatprep.mubr.f32.mxu1 %v3298_v45  ;;  %v3300_v11 = vld [vmem:[#allocation2 + $0x70] sm:$0xff] }
  0xfb   : > { %2817 = vmatmul.mubr.f32.gmra.mrb[82].mxu0 %v5163_v49  ;;  %3238 = vmatprep.subr.bf16.mxu1 %v4418_v1  ;;  %v3315_v45 = vld [vmem:[#allocation2 + $0xf0] sm:$0xff] }
  0xfc   : > { %2819 = vmatprep.mubr.f32.mxu0 %v5164_v53 }
  0xfd   : > { %1533 = vmatmul.mubr.f32.gmra.mrb[98].mxu1 %v4057_v60  ;;  %v5168_v60 = vld [vmem:[#allocation17_spill] sm:$0xff] }
  0xfe   : > { %1537 = vmatprep.mubr.f32.mxu1 %v3299_v54  ;;  %3246 = vmatpush3.bf16.msra.mxu1 %v4418_v1  ;;  %v3301_v1 = vld [vmem:[#allocation2 + $0x88] sm:$0xff]  ;;  %v3316_v54 = vld [vmem:[#allocation2 + $0xb1] sm:$0xff] }
  0xff   : > { %2820 = vmatmul.mubr.f32.gmra.mrb[84].mxu0 %v5165_v56  ;;  %3239 = vmatprep.subr.bf16.mxu1 %v4430_v4 }
 0x100   : > { %2822 = vmatprep.mubr.f32.mxu0 %v5166_v18 }
 0x101   : > { %1538 = vmatmul.mubr.f32.gmra.mrb[100].mxu1 %v4080_v37  ;;  %v5170_v37 = vld [vmem:[#allocation19_spill] sm:$0xff] }
 0x102   : > { %1542 = vmatprep.mubr.f32.mxu1 %v3300_v11  ;;  %3247 = vmatpush3.bf16.msra.mxu1 %v4430_v4  ;;  %v5171_v4 = vld [vmem:[#allocation20_spill] sm:$0xff] }
 0x103   : > { %2823 = vmatmul.mubr.f32.gmra.mrb[86].mxu0 %v5167_v55  ;;  %3240 = vmatprep.subr.bf16.mxu1 %v4444_v47 }
 0x104   : > { %2825 = vmatprep.mubr.f32.mxu0 %v5168_v60 }
 0x105   : > { %1543 = vmatmul.mubr.f32.gmra.mrb[102].mxu1 %v4103_v46 }
 0x106   : > { %1547 = vmatprep.mubr.f32.mxu1 %v3301_v1  ;;  %3248 = vmatpush3.bf16.msra.mxu1 %v4444_v47  ;;  %v3303_v47 = vld [vmem:[#allocation2 + $0xa8] sm:$0xff] }
 0x107   : > { %2826 = vmatmul.mubr.f32.gmra.mrb[88].mxu0 %v5169_v52  ;;  %3241 = vmatprep.subr.bf16.mxu1 %v4458_v41  ;;  %v3317_v1 = vld [vmem:[#allocation2 + $0xc9] sm:$0xff] }
 0x108   : > { %2828 = vmatprep.mubr.f32.mxu0 %v5170_v37 }
 0x109   : > { %1548 = vmatmul.mubr.f32.gmra.mrb[104].mxu1 %v4126_v2 }
 0x10a   : > { %1552 = vmatprep.mubr.f32.mxu1 %v3302_v44  ;;  %3249 = vmatpush3.bf16.msra.mxu1 %v4458_v41  ;;  %v3304_v41 = vld [vmem:[#allocation2 + $0xb0] sm:$0xff]  ;;  %v3318_v44 = vld [vmem:[#allocation2 + $0x108] sm:$0xff] }
 0x10b   : > { %2829 = vmatmul.mubr.f32.gmra.mrb[90].mxu0 %v5171_v4  ;;  %3242 = vmatprep.subr.bf16.mxu1 %v4472_v63 }
 0x10c   : > { %v4539_v46 = vpop.f32.mrb[0].mxu1  ;;  %2831 = vmatprep.mubr.f32.mxu0 %v5172_v62  ;;  %v3319_v62 = vld [vmem:[#allocation2 + $0xd1] sm:$0xff] }
 0x10d   : > { %v4542_v58 = vpop.f32.mrb[1].mxu1  ;;  %1553 = vmatmul.mubr.f32.gmra.mrb[106].mxu1 %v4141_v31  ;;  %v5174_v31 = vld [vmem:[#allocation23_spill] sm:$0xff] }
 0x10e   : > { %1557 = vmatprep.mubr.f32.mxu1 %v3303_v47  ;;  %3250 = vmatpush3.bf16.msra.mxu1 %v4472_v63  ;;  %v3306_v63 = vld [vmem:[#allocation2 + $0xc8] sm:$0xff] }
 0x10f   : > { %2832 = vmatmul.mubr.f32.gmra.mrb[92].mxu0 %v4107_v23  ;;  %3243 = vmatprep.subr.bf16.mxu1 %v4486_v21  ;;  %v3305_v23 = vld [vmem:[#allocation2 + $0x49] sm:$0xff] }
 0x110   : > { %v4548_v2 = vpop.f32.mrb[2].mxu1  ;;  %2834 = vmatprep.mubr.f32.mxu0 %v5173_v5  ;;  %v3320_v5 = vld [vmem:[#allocation2 + $0xe9] sm:$0xff] }
 0x111   : > { %v4551_v35 = vpop.f32.mrb[3].mxu1  ;;  %1558 = vmatmul.mubr.f32.gmra.mrb[108].mxu1 %v4153_v0  ;;  %v3307_v0 = vld [vmem:[#allocation2 + $0x51] sm:$0xff] }
 0x112   : > { %1562 = vmatprep.mubr.f32.mxu1 %v3304_v41  ;;  %3251 = vmatpush3.bf16.msra.mxu1 %v4486_v21 }
 0x113   : > { %2835 = vmatmul.mubr.f32.gmra.mrb[94].mxu0 %v5174_v31  ;;  %3244 = vmatprep.subr.bf16.mxu1 %v4500_v51  ;;  %v3321_v31 = vld [vmem:[#allocation2 + $0x110] sm:$0xff] }
 0x114   : > { %v4557_v12 = vpop.f32.mrb[4].mxu1  ;;  %2869 = vmatprep.mubr.f32.mxu0 %v3305_v23 }
 0x115   : > { %v4559_v57 = vpop.f32.mrb[5].mxu1  ;;  %1563 = vmatmul.mubr.f32.gmra.mrb[110].mxu1 %v4173_v43  ;;  %v3311_v43 = vld [vmem:[#allocation2 + $0x89] sm:$0xff] }
 0x116   : > { %1567 = vmatprep.mubr.f32.mxu1 %v3306_v63  ;;  %3252 = vmatpush3.bf16.msra.mxu1 %v4500_v51  ;;  %v3312_v51 = vld [vmem:[#allocation2 + $0xe8] sm:$0xff]  ;;  %v3322_v63 = vld [vmem:[#allocation2 + $0xf1] sm:$0xff] }
 0x117   : > { %2870 = vmatmul.mubr.f32.vlgmr.msra.gmra.mrb[96].mxu0 %v3307_v0 }
 0x118   : > { %v4563_v15 = vpop.f32.mrb[6].mxu1  ;;  %2872 = vmatprep.mubr.f32.mxu0 %v3308_v16  ;;  %v3323_v16 = vld [vmem:[#allocation2 + $0x109] sm:$0xff] }
 0x119   : > { %v4565_v21 = vpop.f32.mrb[7].mxu1  ;;  %1568 = vmatmul.mubr.f32.gmra.mrb[112].mxu1 %v4186_v3 }
 0x11a   : > { %1572 = vmatprep.mubr.f32.mxu1 %v3309_v25 }
 0x11b   : > { %2873 = vmatmul.mubr.f32.gmra.mrb[98].mxu0 %v3310_v42 }
 0x11c   : > { %v4568_v26 = vpop.f32.mrb[8].mxu1  ;;  %2875 = vmatprep.mubr.f32.mxu0 %v3311_v43  ;;  %v3324_v43 = vld [vmem:[#allocation2 + $0x128] sm:$0xff] }
 0x11d   : > { %v4570_v13 = vpop.f32.mrb[9].mxu1  ;;  %1573 = vmatmul.mubr.f32.gmra.mrb[114].mxu1 %v4198_v17 }
 0x11e   : > { %1577 = vmatprep.mubr.f32.mxu1 %v3312_v51 }
 0x11f   : > { %2876 = vmatmul.mubr.f32.gmra.mrb[100].mxu0 %v3313_v7 }
 0x120   : > { %v4573_v10 = vpop.f32.mrb[10].mxu1  ;;  %2878 = vmatprep.mubr.f32.mxu0 %v3314_v39 }
 0x121   : > { %v4575_v3 = vpop.f32.mrb[11].mxu1  ;;  %1578 = vmatmul.mubr.f32.gmra.mrb[116].mxu1 %v4211_v24 }
 0x122   : > { %1582 = vmatprep.mubr.f32.mxu1 %v3315_v45  ;;  %v3325_v45 = vld [vmem:[#allocation2 + $0x130] sm:$0xff] }
 0x123   : > { %2879 = vmatmul.mubr.f32.gmra.mrb[102].mxu0 %v3316_v54 }
 0x124   : > { %v4578_v11 = vpop.f32.mrb[12].mxu1  ;;  %2881 = vmatprep.mubr.f32.mxu0 %v3317_v1  ;;  %v3326_v1 = vld [vmem:[#allocation2 + $0x148] sm:$0xff] }
 0x125   : > { %v4580_v17 = vpop.f32.mrb[13].mxu1  ;;  %1583 = vmatmul.mubr.f32.gmra.mrb[118].mxu1 %v4224_v6 }
 0x126   : > { %1587 = vmatprep.mubr.f32.mxu1 %v3318_v44 }
 0x127   : > { %2882 = vmatmul.mubr.f32.gmra.mrb[104].mxu0 %v3319_v62  ;;  %v3327_v62 = vld [vmem:[#allocation2 + $0x150] sm:$0xff] }
 0x128   : > { %v4583_v47 = vpop.f32.mrb[14].mxu1  ;;  %2884 = vmatprep.mubr.f32.mxu0 %v3320_v5 }
 0x129   : > { %v4585_v24 = vpop.f32.mrb[15].mxu1  ;;  %1588 = vmatmul.mubr.f32.gmra.mrb[120].mxu1 %v4237_v9 }
 0x12a   : > { %v581_v41 = vpop.f32.mrb[0].mxu0  ;;  %1592 = vmatprep.mubr.f32.mxu1 %v3321_v31 }
 0x12b   : > { %v4589_v23 = vadd.f32 %v4542_v58, %v581_v41  ;;  %2885 = vmatmul.mubr.f32.gmra.mrb[106].mxu0 %v3322_v63  ;;  %v583_v6 = vpop.f32.mrb[1].mxu0  ;;  %v3328_v41 = vld [vmem:[#allocation2 + $0x168] sm:$0xff]  ;;  %v3329_v63 = vld [vmem:[#allocation2 + $0x170] sm:$0xff] }
 0x12c   : > { %v4591_v0 = vpop.f32.mrb[16].mxu1  ;;  %2887 = vmatprep.mubr.f32.mxu0 %v3323_v16  ;;  %v3330_v16 = vld [vmem:[#allocation2 + $0x188] sm:$0xff] }
 0x12d   : > { %v4593_v25 = vpop.f32.mrb[17].mxu1  ;;  %1593 = vmatmul.mubr.f32.gmra.mrb[122].mxu1 %v4250_v32 }
 0x12e   : > { %v586_v42 = vpop.f32.mrb[2].mxu0  ;;  %1597 = vmatprep.mubr.f32.mxu1 %v3324_v43 }
 0x12f   : > { %v4597_v9 = vadd.f32 %v4539_v46, %v586_v42  ;;  %2888 = vmatmul.mubr.f32.gmra.mrb[108].mxu0 %v5161_v29  ;;  %v588_v58 = vpop.f32.mrb[3].mxu0 }
 0x130   : > { %v4600_v51 = vpop.f32.mrb[18].mxu1  ;;  %2890 = vmatprep.mubr.f32.mxu0 %v5162_v40  ;;  %v3331_v58 = vld [vmem:[#allocation2 + $0x190] sm:$0xff] }
 0x131   : > { %v4603_v7 = vpop.f32.mrb[19].mxu1  ;;  %1598 = vmatmul.mubr.f32.gmra.mrb[124].mxu1 %v4263_v8 }
 0x132   : > { %v591_v39 = vpop.f32.mrb[4].mxu0  ;;  %1602 = vmatprep.mubr.f32.mxu1 %v3325_v45 }
 0x133   : > { %v4607_v32 = vadd.f32 %v4551_v35, %v591_v39  ;;  %2891 = vmatmul.mubr.f32.gmra.mrb[110].mxu0 %v5163_v49  ;;  %v593_v46 = vpop.f32.mrb[5].mxu0 }
 0x134   : > { %v4610_v54 = vpop.f32.mrb[20].mxu1  ;;  %2893 = vmatprep.mubr.f32.mxu0 %v5164_v53 }
 0x135   : > { %v4613_v29 = vpop.f32.mrb[21].mxu1  ;;  %1603 = vmatmul.mubr.f32.gmra.mrb[126].mxu1 %v4276_v27 }
 0x136   : > { %v596_v40 = vpop.f32.mrb[6].mxu0  ;;  %1607 = vmatprep.mubr.f32.mxu1 %v3326_v1  ;;  %v3332_v1 = vld [vmem:[#allocation2 + $0x1a8] sm:$0xff] }
 0x137   : > { %v4617_v8 = vadd.f32 %v4548_v2, %v596_v40  ;;  %2894 = vmatmul.mubr.f32.gmra.mrb[112].mxu0 %v5165_v56  ;;  %v598_v35 = vpop.f32.mrb[7].mxu0 }
 0x138   : > { %v4620_v44 = vpop.f32.mrb[22].mxu1  ;;  %2896 = vmatprep.mubr.f32.mxu0 %v5166_v18 }
 0x139   : > { %v4623_v49 = vpop.f32.mrb[23].mxu1  ;;  %1608 = vmatmul.mubr.f32.gmra.mrb[128].mxu1 %v4289_v48 }
 0x13a   : > { %v601_v53 = vpop.f32.mrb[8].mxu0  ;;  %1612 = vmatprep.mubr.f32.mxu1 %v3327_v62 }
 0x13b   : > { %v4627_v27 = vadd.f32 %v4559_v57, %v601_v53  ;;  %v603_v5 = vpop.f32.mrb[9].mxu0  ;;  %2897 = vmatmul.mubr.f32.gmra.mrb[114].mxu0 %v5167_v55 }
 0x13c   : > { %v4630_v2 = vpop.f32.mrb[24].mxu1  ;;  %2899 = vmatprep.mubr.f32.mxu0 %v5168_v60 }
 0x13d   : > { %v4633_v56 = vpop.f32.mrb[25].mxu1  ;;  %1613 = vmatmul.mubr.f32.gmra.mrb[130].mxu1 %v4302_v59 }
 0x13e   : > { %v606_v18 = vpop.f32.mrb[10].mxu0  ;;  %1617 = vmatprep.mubr.f32.mxu1 %v3328_v41 }
 0x13f   : > { %v4637_v48 = vadd.f32 %v4557_v12, %v606_v18  ;;  %v608_v31 = vpop.f32.mrb[11].mxu0  ;;  %2900 = vmatmul.mubr.f32.gmra.mrb[116].mxu0 %v5169_v52 }
 0x140   : > { %v4640_v57 = vpop.f32.mrb[26].mxu1  ;;  %2902 = vmatprep.mubr.f32.mxu0 %v5170_v37 }
 0x141   : > { %v4643_v55 = vpop.f32.mrb[27].mxu1  ;;  %1618 = vmatmul.mubr.f32.gmra.mrb[132].mxu1 %v4315_v34 }
 0x142   : > { %v611_v60 = vpop.f32.mrb[12].mxu0  ;;  %1622 = vmatprep.mubr.f32.mxu1 %v3329_v63 }
 0x143   : > { %v4647_v59 = vadd.f32 %v4565_v21, %v611_v60  ;;  %v613_v6 = vpop.f32.mrb[13].mxu0  ;;  %2903 = vmatmul.mubr.f32.gmra.mrb[118].mxu0 %v5171_v4 }
 0x144   : > { %v4650_v12 = vpop.f32.mrb[28].mxu1 }
 0x145   : > { %v4652_v52 = vpop.f32.mrb[29].mxu1  ;;  %1623 = vmatmul.mubr.f32.gmra.mrb[134].mxu1 %v4328_v30 }
 0x146   : > { %v616_v37 = vpop.f32.mrb[14].mxu0  ;;  %1627 = vmatprep.mubr.f32.mxu1 %v3330_v16 }
 0x147   : > { %v4656_v34 = vadd.f32 %v4563_v15, %v616_v37  ;;  %v618_v42 = vpop.f32.mrb[15].mxu0 }
 0x148   : > { %v4658_v43 = vpop.f32.mrb[30].mxu1 }
 0x149   : > { %v4660_v21 = vpop.f32.mrb[31].mxu1  ;;  %1628 = vmatmul.mubr.f32.gmra.mrb[136].mxu1 %v4341_v33 }
 0x14a   : > { %v621_v4 = vpop.f32.mrb[16].mxu0  ;;  %1632 = vmatprep.mubr.f32.mxu1 %v3331_v58 }
 0x14b   : > { %v4664_v39 = vadd.f32 %v4570_v13, %v621_v4  ;;  %v623_v30 = vpop.f32.mrb[17].mxu0 }
 0x14c   : > { %v1031_v45 = vpop.f32.mrb[32].mxu1 }
 0x14d   : > { %v4667_v46 = vadd.f32 %v1031_v45, %v4589_v23  ;;  %v1033_v15 = vpop.f32.mrb[33].mxu1  ;;  %1633 = vmatmul.mubr.f32.gmra.mrb[138].mxu1 %v4354_v36  ;;  %v3333_v23 = vld [vmem:[#allocation2 + $0x1b0] sm:$0xff] }
 0x14e   : > { %v626_v40 = vpop.f32.mrb[18].mxu0  ;;  %1637 = vmatprep.mubr.f32.mxu1 %v3332_v1 }
 0x14f   : > { %v4671_v35 = vadd.f32 %v4568_v26, %v626_v40  ;;  %v628_v33 = vpop.f32.mrb[19].mxu0 }
 0x150   : > { %v1036_v53 = vpop.f32.mrb[34].mxu1  ;;  %v3337_v33 = vld [vmem:[#allocation2 + $0x1f0] sm:$0xff] }
 0x151   : > { %v4674_v62 = vadd.f32 %v1036_v53, %v4597_v9  ;;  %v1038_v13 = vpop.f32.mrb[35].mxu1  ;;  %1638 = vmatmul.mubr.f32.gmra.mrb[140].mxu1 %v4361_v61  ;;  %v3334_v9 = vld [vmem:[#allocation2 + $0x1c8] sm:$0xff] }
 0x152   : > { %v631_v5 = vpop.f32.mrb[20].mxu0  ;;  %1642 = vmatprep.mubr.f32.mxu1 %v3333_v23  ;;  %v1979_v23 = vld [vmem:[%s5096_s2 + $0x10] sm:$0xff] }
 0x153   : > { %v4678_v18 = vadd.f32 %v4575_v3, %v631_v5  ;;  %v633_v36 = vpop.f32.mrb[21].mxu0 }
 0x154   : > { %v1041_v41 = vpop.f32.mrb[36].mxu1  ;;  %v1980_v36 = vld [vmem:[%s5096_s2 + $0x18] sm:$0xff] }
 0x155   : > { %v4681_v31 = vadd.f32 %v1041_v41, %v4607_v32  ;;  %v1043_v26 = vpop.f32.mrb[37].mxu1  ;;  %1643 = vmatmul.mubr.f32.gmra.mrb[142].mxu1 %v4368_v14  ;;  %v3335_v32 = vld [vmem:[#allocation2 + $0x1d0] sm:$0xff]  ;;  %v3338_v41 = vld [vmem:[#allocation2 + $0x208] sm:$0xff] }
 0x156   : > { %v636_v60 = vpop.f32.mrb[22].mxu0  ;;  %1647 = vmatprep.mubr.f32.mxu1 %v3334_v9  ;;  %v3225_v26 = vpack.c.bf16 %v1980_v36, %v1979_v23 }
 0x157   : > { %v4685_v63 = vadd.f32 %v4573_v10, %v636_v60  ;;  %v638_v61 = vpop.f32.mrb[23].mxu0 }
 0x158   : > { %v1046_v6 = vpop.f32.mrb[38].mxu1 }
 0x159   : > { %v4688_v37 = vadd.f32 %v1046_v6, %v4617_v8  ;;  %v1048_v3 = vpop.f32.mrb[39].mxu1  ;;  %1648 = vmatmul.mubr.f32.gmra.mrb[144].mxu1 %v4374_v20  ;;  %v3336_v8 = vld [vmem:[#allocation2 + $0x1e8] sm:$0xff]  ;;  %v1981_v6 = vld [vmem:[%s5096_s2 + $0x20] sm:$0xff] }
 0x15a   : > { %v641_v16 = vpop.f32.mrb[24].mxu0  ;;  %1652 = vmatprep.mubr.f32.mxu1 %v3335_v32  ;;  %v1982_v3 = vld [vmem:[%s5096_s2 + $0x28] sm:$0xff] }
 0x15b   : > { %v4692_v42 = vadd.f32 %v4580_v17, %v641_v16  ;;  %v643_v14 = vpop.f32.mrb[25].mxu0  ;;  %v3339_v16 = vld [vmem:[#allocation2 + $0x210] sm:$0xff]  ;;  %v3229_v32 = vpack.c.bf16 %v1982_v3, %v1981_v6 }
 0x15c   : > { %v1051_v4 = vpop.f32.mrb[40].mxu1  ;;  %v3343_v6 = vld [vmem:[#allocation2 + $0x1e9] sm:$0xff] }
 0x15d   : > { %v4695_v58 = vadd.f32 %v1051_v4, %v4627_v27  ;;  %v1053_v10 = vpop.f32.mrb[41].mxu1  ;;  %1653 = vmatmul.mubr.f32.gmra.mrb[146].mxu1 %v4380_v19  ;;  %v1977_v27 = vld [vmem:[%s5096_s2] sm:$0xff]  ;;  %v1978_v19 = vld [vmem:[%s5096_s2 + $0x8] sm:$0xff] }
 0x15e   : > { %v646_v30 = vpop.f32.mrb[26].mxu0  ;;  %1657 = vmatprep.mubr.f32.mxu1 %v3336_v8  ;;  %v1984_v8 = vld [vmem:[%s5096_s2 + $0x38] sm:$0xff] }
 0x15f   : > { %v4699_v45 = vadd.f32 %v4578_v11, %v646_v30  ;;  %v648_v20 = vpop.f32.mrb[27].mxu0  ;;  %v3221_v11 = vpack.c.bf16 %v1978_v19, %v1977_v27  ;;  %v1983_v30 = vld [vmem:[%s5096_s2 + $0x30] sm:$0xff] }
 0x160   : > { %v1056_v15 = vpop.f32.mrb[42].mxu1  ;;  %v3340_v20 = vld [vmem:[#allocation2 + $0x8] sm:$0xff] }
 0x161   : > { %v4702_v40 = vadd.f32 %v1056_v15, %v4637_v48  ;;  %v1058_v17 = vpop.f32.mrb[43].mxu1  ;;  %1658 = vmatmul.mubr.f32.gmra.mrb[148].mxu1 %v4386_v22  ;;  %3222 = vmatprep.subr.bf16.mxu0 %v3221_v11  ;;  %v345_v15 = vld [vmem:[#allocation2 + $0x227] sm:$0xff] }
 0x162   : > { %v651_v1 = vpop.f32.mrb[28].mxu0  ;;  %1662 = vmatprep.mubr.f32.mxu1 %v3337_v33  ;;  %3224 = vmatpush3.bf16.msra.mxu0 %v3221_v11  ;;  %v3233_v17 = vpack.c.bf16 %v1984_v8, %v1983_v30  ;;  %v346_v11 = vld [vmem:[#allocation2 + $0x22f] sm:$0xff] }
 0x163   : > { %v4712_v53 = vadd.f32 %v4585_v24, %v651_v1  ;;  %v653_v48 = vpop.f32.mrb[29].mxu0  ;;  %3226 = vmatprep.subr.bf16.mxu0 %v3225_v26  ;;  %v417_v30 = vld [vmem:[#allocation2 + $0x229] sm:$0xff] }
 0x164   : > { %v1061_v13 = vpop.f32.mrb[44].mxu1 }
 0x165   : > { %v4715_v22 = vadd.f32 %v1061_v13, %v4647_v59  ;;  %v1063_v5 = vpop.f32.mrb[45].mxu1  ;;  %1663 = vmatmul.mubr.f32.gmra.mrb[150].mxu1 %v4392_v28 }
 0x166   : > { %v656_v24 = vpop.f32.mrb[30].mxu0  ;;  %1667 = vmatprep.mubr.f32.mxu1 %v3338_v41  ;;  %3228 = vmatpush3.bf16.msra.mxu0 %v3225_v26 }
 0x167   : > { %v4725_v60 = vadd.f32 %v4583_v47, %v656_v24  ;;  %v658_v59 = vpop.f32.mrb[31].mxu0  ;;  %3230 = vmatprep.subr.bf16.mxu0 %v3229_v32  ;;  %v3341_v24 = vld [vmem:[#allocation2 + $0x1c9] sm:$0xff] }
 0x168   : > { %v1066_v9 = vpop.f32.mrb[46].mxu1 }
 0x169   : > { %v4728_v28 = vadd.f32 %v1066_v9, %v4656_v34  ;;  %v1068_v61 = vpop.f32.mrb[47].mxu1  ;;  %1668 = vmatmul.mubr.f32.gmra.mrb[152].mxu1 %v4399_v50  ;;  %v3342_v9 = vld [vmem:[#allocation2 + $0x1d1] sm:$0xff] }
 0x16a   : > { %v661_v47 = vpop.f32.mrb[32].mxu0  ;;  %1672 = vmatprep.mubr.f32.mxu1 %v3339_v16  ;;  %3232 = vmatpush3.bf16.msra.mxu0 %v3229_v32  ;;  %v3344_v32 = vld [vmem:[#allocation2 + $0x1f1] sm:$0xff] }
 0x16b   : > { %v4738_v14 = vadd.f32 %v4593_v25, %v661_v47  ;;  %v663_v34 = vpop.f32.mrb[33].mxu0  ;;  %3234 = vmatprep.subr.bf16.mxu0 %v3233_v17 }
 0x16c   : > { %v1071_v4 = vpop.f32.mrb[48].mxu1 }
 0x16d   : > { %v4741_v50 = vadd.f32 %v1071_v4, %v4664_v39  ;;  %v1073_v10 = vpop.f32.mrb[49].mxu1  ;;  %1673 = vmatmul.mubr.f32.gmra.mrb[154].mxu1 %v4406_v38  ;;  %v3345_v4 = vld [vmem:[#allocation2 + $0x209] sm:$0xff] }
 0x16e   : > { %v666_v25 = vpop.f32.mrb[34].mxu0  ;;  %1677 = vmatprep.mubr.f32.mxu1 %v3340_v20  ;;  %3236 = vmatpush3.bf16.msra.mxu0 %v3233_v17 }
 0x16f   : > { %v4751_v39 = vadd.f32 %v4591_v0, %v666_v25  ;;  %v668_v27 = vpop.f32.mrb[35].mxu0 }
 0x170   : > { %v1076_v19 = vpop.f32.mrb[50].mxu1 }
 0x171   : > { %v4754_v38 = vadd.f32 %v1076_v19, %v4671_v35  ;;  %v1078_v1 = vpop.f32.mrb[51].mxu1  ;;  %1678 = vmatmul.mubr.f32.gmra.mrb[156].mxu1 %v345_v15 }
 0x172   : > { %v671_v33 = vpop.f32.mrb[36].mxu0  ;;  %1682 = vmatprep.mubr.f32.mxu1 %v3340_v20  ;;  %v3346_v20 = vld [vmem:[#allocation2 + $0x211] sm:$0xff] }
 0x173   : > { %v4757_v48 = vadd.f32 %v4603_v7, %v671_v33  ;;  %v673_v13 = vpop.f32.mrb[37].mxu0 }
 0x174   : > { %v1081_v5 = vpop.f32.mrb[52].mxu1 }
 0x175   : > { %v4760_v0 = vadd.f32 %v1081_v5, %v4678_v18  ;;  %v1083_v23 = vpop.f32.mrb[53].mxu1  ;;  %1683 = vmatmul.mubr.f32.gmra.mrb[158].mxu1 %v346_v11 }
 0x176   : > { %v676_v36 = vpop.f32.mrb[38].mxu0  ;;  %2905 = vmatprep.mubr.f32.mxu1 %v3341_v24 }
 0x177   : > { %v4763_v35 = vadd.f32 %v4600_v51, %v676_v36  ;;  %v678_v41 = vpop.f32.mrb[39].mxu0 }
 0x178   : > { %v1086_v26 = vpop.f32.mrb[54].mxu1 }
 0x179   : > { %v4766_v59 = vadd.f32 %v1086_v26, %v4685_v63  ;;  %v1088_v7 = vpop.f32.mrb[55].mxu1  ;;  %2906 = vmatmul.mubr.f32.vlgmr.msra.gmra.mrb[160].mxu1 %v3342_v9 }
 0x17a   : > { %v681_v61 = vpop.f32.mrb[40].mxu0  ;;  %2908 = vmatprep.mubr.f32.mxu1 %v3343_v6 }
 0x17b   : > { %v907_v18 = vadd.f32 %v4613_v29, %v681_v61  ;;  %v683_v3 = vpop.f32.mrb[41].mxu0 }
 0x17c   : > { %v1091_v47 = vpop.f32.mrb[56].mxu1 }
 0x17d   : > { %v4770_v16 = vadd.f32 %v1091_v47, %v4692_v42  ;;  %v1093_v51 = vpop.f32.mrb[57].mxu1  ;;  %2909 = vmatmul.mubr.f32.gmra.mrb[162].mxu1 %v3344_v32  ;;  %v418_v42 = vld [vmem:[#allocation2 + $0x231] sm:$0xff] }
 0x17e   : > { %v686_v34 = vpop.f32.mrb[42].mxu0  ;;  %2911 = vmatprep.mubr.f32.mxu1 %v3345_v4 }
 0x17f   : > { %v912_v63 = vadd.f32 %v4610_v54, %v686_v34  ;;  %v688_v10 = vpop.f32.mrb[43].mxu0 }
 0x180   : > { %v1096_v8 = vpop.f32.mrb[58].mxu1 }
 0x181   : > { %v4774_v25 = vadd.f32 %v1096_v8, %v4699_v45  ;;  %v1098_v29 = vpop.f32.mrb[59].mxu1  ;;  %2912 = vmatmul.mubr.f32.gmra.mrb[164].mxu1 %v3346_v20 }
 0x182   : > { %v691_v15 = vpop.f32.mrb[44].mxu0  ;;  %2914 = vmatprep.mubr.f32.mxu1 %v417_v30 }
 0x183   : > { %v917_v17 = vadd.f32 %v4623_v49, %v691_v15  ;;  %v693_v27 = vpop.f32.mrb[45].mxu0 }
 0x184   : > { %v1101_v19 = vpop.f32.mrb[60].mxu1 }
 0x185   : > { %v4778_v1 = vadd.f32 %v1101_v19, %v4712_v53  ;;  %v1103_v54 = vpop.f32.mrb[61].mxu1  ;;  %2915 = vmatmul.mubr.f32.gmra.mrb[166].mxu1 %v418_v42 }
 0x186   : > { %v696_v33 = vpop.f32.mrb[46].mxu0 }
 0x187   : > { %v922_v11 = vadd.f32 %v4620_v44, %v696_v33  ;;  %v698_v45 = vpop.f32.mrb[47].mxu0 }
 0x188   : > { %v1106_v13 = vpop.f32.mrb[62].mxu1 }
 0x189   : > { %v4782_v5 = vadd.f32 %v1106_v13, %v4725_v60  ;;  %v1108_v23 = vpop.f32.mrb[63].mxu1 }
 0x18a   : > { %v701_v36 = vpop.f32.mrb[48].mxu0 }
 0x18b   : > { %v927_v24 = vadd.f32 %v4633_v56, %v701_v36  ;;  %v703_v49 = vpop.f32.mrb[49].mxu0 }
 0x18c   : > { %v1111_v41 = vpop.f32.mrb[64].mxu1 }
 0x18d   : > { %v4786_v26 = vadd.f32 %v1111_v41, %v4738_v14  ;;  %v1113_v53 = vpop.f32.mrb[65].mxu1 }
 0x18e   : > { %v706_v7 = vpop.f32.mrb[50].mxu0 }
 0x18f   : > { %v932_v9 = vadd.f32 %v4630_v2, %v706_v7  ;;  %v708_v61 = vpop.f32.mrb[51].mxu0 }
 0x190   : > { %v1116_v44 = vpop.f32.mrb[66].mxu1 }
 0x191   : > { %v4790_v6 = vadd.f32 %v1116_v44, %v4751_v39  ;;  %v1118_v60 = vpop.f32.mrb[67].mxu1 }
 0x192   : > { %v711_v3 = vpop.f32.mrb[52].mxu0 }
 0x193   : > { %v937_v47 = vadd.f32 %v4643_v55, %v711_v3  ;;  %v713_v51 = vpop.f32.mrb[53].mxu0 }
 0x194   : > { %v1121_v56 = vpop.f32.mrb[68].mxu1 }
 0x195   : > { %v4794_v32 = vadd.f32 %v1121_v56, %v4757_v48  ;;  %v1123_v14 = vpop.f32.mrb[69].mxu1 }
 0x196   : > { %v716_v34 = vpop.f32.mrb[54].mxu0 }
 0x197   : > { %v942_v4 = vadd.f32 %v4640_v57, %v716_v34  ;;  %v718_v10 = vpop.f32.mrb[55].mxu0 }
 0x198   : > { %v1126_v2 = vpop.f32.mrb[70].mxu1 }
 0x199   : > { %v4798_v30 = vadd.f32 %v1126_v2, %v4763_v35  ;;  %v1128_v39 = vpop.f32.mrb[71].mxu1 }
 0x19a   : > { %v721_v8 = vpop.f32.mrb[56].mxu0 }
 0x19b   : > { %v947_v29 = vadd.f32 %v4652_v52, %v721_v8  ;;  %v723_v20 = vpop.f32.mrb[57].mxu0 }
 0x19c   : > { %v1131_v55 = vpop.f32.mrb[72].mxu1 }
 0x19d   : > { %v4801_v15 = vadd.f32 %v1131_v55, %v907_v18  ;;  %v1133_v42 = vpop.f32.mrb[73].mxu1 }
 0x19e   : > { %v726_v48 = vpop.f32.mrb[58].mxu0 }
 0x19f   : > { %v952_v27 = vadd.f32 %v4650_v12, %v726_v48  ;;  %v728_v19 = vpop.f32.mrb[59].mxu0 }
 0x1a0   : > { %v1136_v54 = vpop.f32.mrb[74].mxu1 }
 0x1a1   : > { %v4804_v57 = vadd.f32 %v1136_v54, %v912_v63  ;;  %v1138_v33 = vpop.f32.mrb[75].mxu1 }
 0x1a2   : > { %v731_v45 = vpop.f32.mrb[60].mxu0 }
 0x1a3   : > { %v957_v35 = vadd.f32 %v4660_v21, %v731_v45  ;;  %v733_v13 = vpop.f32.mrb[61].mxu0 }
 0x1a4   : > { %v1141_v23 = vpop.f32.mrb[76].mxu1 }
 0x1a5   : > { %v4807_v36 = vadd.f32 %v1141_v23, %v917_v17  ;;  %v1143_v52 = vpop.f32.mrb[77].mxu1 }
 0x1a6   : > { %v736_v49 = vpop.f32.mrb[62].mxu0 }
 0x1a7   : > { %v962_v18 = vadd.f32 %v4658_v43, %v736_v49  ;;  %v738_v41 = vpop.f32.mrb[63].mxu0 }
 0x1a8   : > { %v1146_v53 = vpop.f32.mrb[78].mxu1 }
 0x1a9   : > { %v4810_v7 = vadd.f32 %v1146_v53, %v922_v11  ;;  %v1148_v12 = vpop.f32.mrb[79].mxu1 }
 0x1aa   : > { %v2791_v61 = vpop.f32.mrb[64].mxu0 }
 0x1ab   : > { %v4813_v63 = vadd.f32 %v2791_v61, %v4674_v62  ;;  %v1256_v44 = vpop.f32.mrb[65].mxu0 }
 0x1ac   : > { %v1151_v60 = vpop.f32.mrb[80].mxu1  ;;  %v4816_v21 = vadd.f32 %v1256_v44, %v4667_v46 }
 0x1ad   : > { %v4818_v17 = vadd.f32 %v1151_v60, %v927_v24  ;;  %v1153_v3 = vpop.f32.mrb[81].mxu1 }
 0x1ae   : > { %v2794_v51 = vpop.f32.mrb[66].mxu0 }
 0x1af   : > { %v4821_v43 = vadd.f32 %v2794_v51, %v4688_v37  ;;  %v1266_v56 = vpop.f32.mrb[67].mxu0 }
 0x1b0   : > { %v1156_v11 = vpop.f32.mrb[82].mxu1  ;;  %v4824_v14 = vadd.f32 %v1266_v56, %v4681_v31 }
 0x1b1   : > { %v4826_v34 = vadd.f32 %v1156_v11, %v932_v9  ;;  %v1158_v62 = vpop.f32.mrb[83].mxu1 }
 0x1b2   : > { %v2797_v10 = vpop.f32.mrb[68].mxu0 }
 0x1b3   : > { %v4829_v2 = vadd.f32 %v2797_v10, %v4702_v40  ;;  %v1276_v46 = vpop.f32.mrb[69].mxu0 }
 0x1b4   : > { %v1161_v24 = vpop.f32.mrb[84].mxu1  ;;  %v4832_v39 = vadd.f32 %v1276_v46, %v4695_v58 }
 0x1b5   : > { %v4834_v8 = vadd.f32 %v1161_v24, %v937_v47  ;;  %v1163_v37 = vpop.f32.mrb[85].mxu1 }
 0x1b6   : > { %v2800_v20 = vpop.f32.mrb[70].mxu0 }
 0x1b7   : > { %v4837_v55 = vadd.f32 %v2800_v20, %v4728_v28  ;;  %v1286_v31 = vpop.f32.mrb[71].mxu0 }
 0x1b8   : > { %v1166_v9 = vpop.f32.mrb[86].mxu1  ;;  %v4840_v42 = vadd.f32 %v1286_v31, %v4715_v22 }
 0x1b9   : > { %v1167_v48 = vadd.f32 %v1166_v9, %v942_v4  ;;  %v1168_v40 = vpop.f32.mrb[87].mxu1 }
 0x1ba   : > { %v2803_v19 = vpop.f32.mrb[72].mxu0 }
 0x1bb   : > { %v4843_v54 = vadd.f32 %v2803_v19, %v4754_v38  ;;  %v1296_v58 = vpop.f32.mrb[73].mxu0 }
 0x1bc   : > { %v1171_v33 = vpop.f32.mrb[88].mxu1  ;;  %v4846_v47 = vadd.f32 %v1296_v58, %v4741_v50 }
 0x1bd   : > { %v1172_v45 = vadd.f32 %v1171_v33, %v947_v29  ;;  %v1173_v13 = vpop.f32.mrb[89].mxu1 }
 0x1be   : > { %v2806_v28 = vpop.f32.mrb[74].mxu0 }
 0x1bf   : > { %v4849_v23 = vadd.f32 %v2806_v28, %v4766_v59  ;;  %v1306_v52 = vpop.f32.mrb[75].mxu0 }
 0x1c0   : > { %v1176_v22 = vpop.f32.mrb[90].mxu1  ;;  %v4852_v4 = vadd.f32 %v1306_v52, %v4760_v0 }
 0x1c1   : > { %v1177_v49 = vadd.f32 %v1176_v22, %v952_v27  ;;  %v1178_v41 = vpop.f32.mrb[91].mxu1 }
 0x1c2   : > { %v2809_v38 = vpop.f32.mrb[76].mxu0 }
 0x1c3   : > { %v4855_v53 = vadd.f32 %v2809_v38, %v4774_v25  ;;  %v1316_v12 = vpop.f32.mrb[77].mxu0 }
 0x1c4   : > { %v1181_v50 = vpop.f32.mrb[92].mxu1  ;;  %v4858_v29 = vadd.f32 %v1316_v12, %v4770_v16 }
 0x1c5   : > { %v1182_v61 = vadd.f32 %v1181_v50, %v957_v35  ;;  %v1183_v44 = vpop.f32.mrb[93].mxu1 }
 0x1c6   : > { %v2812_v59 = vpop.f32.mrb[78].mxu0 }
 0x1c7   : > { %v4861_v60 = vadd.f32 %v2812_v59, %v4782_v5  ;;  %v1326_v3 = vpop.f32.mrb[79].mxu0 }
 0x1c8   : > { %v1186_v0 = vpop.f32.mrb[94].mxu1  ;;  %v4864_v27 = vadd.f32 %v1326_v3, %v4778_v1 }
 0x1c9   : > { %v1187_v51 = vadd.f32 %v1186_v0, %v962_v18  ;;  %v1188_v56 = vpop.f32.mrb[95].mxu1 }
 0x1ca   : > { %v2815_v25 = vpop.f32.mrb[80].mxu0 }
 0x1cb   : > { %v4867_v11 = vadd.f32 %v2815_v25, %v4790_v6  ;;  %v1336_v62 = vpop.f32.mrb[81].mxu0 }
 0x1cc   : > { %v4870_v16 = vadd.f32 %v1336_v62, %v4786_v26  ;;  %v1529_v35 = vpop.f32.mrb[96].mxu1 }
 0x1cd   : > { %v1531_v10 = vpop.f32.mrb[97].mxu1 }
 0x1ce   : > { %v2818_v46 = vpop.f32.mrb[82].mxu0 }
 0x1cf   : > { %v4873_v5 = vadd.f32 %v2818_v46, %v4798_v30  ;;  %v1346_v24 = vpop.f32.mrb[83].mxu0 }
 0x1d0   : > { %v4876_v1 = vadd.f32 %v1346_v24, %v4794_v32  ;;  %v1534_v18 = vpop.f32.mrb[98].mxu1 }
 0x1d1   : > { %v1536_v37 = vpop.f32.mrb[99].mxu1 }
 0x1d2   : > { %v2821_v20 = vpop.f32.mrb[84].mxu0 }
 0x1d3   : > { %v4879_v6 = vadd.f32 %v2821_v20, %v4804_v57  ;;  %v1356_v31 = vpop.f32.mrb[85].mxu0 }
 0x1d4   : > { %v4882_v26 = vadd.f32 %v1356_v31, %v4801_v15  ;;  %v1539_v9 = vpop.f32.mrb[100].mxu1 }
 0x1d5   : > { %v1541_v40 = vpop.f32.mrb[101].mxu1 }
 0x1d6   : > { %v2824_v19 = vpop.f32.mrb[86].mxu0 }
 0x1d7   : > { %v4885_v30 = vadd.f32 %v2824_v19, %v4810_v7  ;;  %v1366_v58 = vpop.f32.mrb[87].mxu0 }
 0x1d8   : > { %v4888_v32 = vadd.f32 %v1366_v58, %v4807_v36  ;;  %v1544_v33 = vpop.f32.mrb[102].mxu1 }
 0x1d9   : > { %v1546_v13 = vpop.f32.mrb[103].mxu1 }
 0x1da   : > { %v2827_v28 = vpop.f32.mrb[88].mxu0 }
 0x1db   : > { %v4891_v57 = vadd.f32 %v2827_v28, %v4826_v34  ;;  %v1376_v52 = vpop.f32.mrb[89].mxu0 }
 0x1dc   : > { %v4894_v15 = vadd.f32 %v1376_v52, %v4818_v17  ;;  %v1549_v22 = vpop.f32.mrb[104].mxu1 }
 0x1dd   : > { %v1551_v41 = vpop.f32.mrb[105].mxu1 }
 0x1de   : > { %v2830_v38 = vpop.f32.mrb[90].mxu0 }
 0x1df   : > { %v4896_v12 = vadd.f32 %v2830_v38, %v1167_v48  ;;  %v1386_v7 = vpop.f32.mrb[91].mxu0 }
 0x1e0   : > { %v4899_v50 = vadd.f32 %v1386_v7, %v4834_v8  ;;  %v1554_v36 = vpop.f32.mrb[106].mxu1 }
 0x1e1   : > { %v1556_v44 = vpop.f32.mrb[107].mxu1 }
 0x1e2   : > { %v2833_v59 = vpop.f32.mrb[92].mxu0 }
 0x1e3   : > { %v4901_v3 = vadd.f32 %v2833_v59, %v1177_v49  ;;  %v1396_v34 = vpop.f32.mrb[93].mxu0 }
 0x1e4   : > { %v4903_v0 = vadd.f32 %v1396_v34, %v1172_v45  ;;  %v1559_v56 = vpop.f32.mrb[108].mxu1 }
 0x1e5   : > { %v1561_v17 = vpop.f32.mrb[109].mxu1 }
 0x1e6   : > { %v2836_v25 = vpop.f32.mrb[94].mxu0 }
 0x1e7   : > { %v4905_v62 = vadd.f32 %v2836_v25, %v1187_v51  ;;  %v1406_v10 = vpop.f32.mrb[95].mxu0 }
 0x1e8   : > { %v4907_v48 = vadd.f32 %v1406_v10, %v1182_v61  ;;  %v1564_v46 = vpop.f32.mrb[110].mxu1 }
 0x1e9   : > { %v1566_v24 = vpop.f32.mrb[111].mxu1 }
 0x1ea   : > { %v2871_v8 = vpop.f32.mrb[96].mxu0 }
 0x1eb   : > { %v1760_v37 = vadd.f32 %v2871_v8, %v1534_v18  ;;  %v1754_v20 = vpop.f32.mrb[97].mxu0 }
 0x1ec   : > { %v1569_v31 = vpop.f32.mrb[112].mxu1  ;;  %v1755_v40 = vadd.f32 %v1754_v20, %v1529_v35 }
 0x1ed   : > { %v1914_v49 = vadd.f32 %v1760_v37, %v4813_v63  ;;  %v1571_v19 = vpop.f32.mrb[113].mxu1 }
 0x1ee   : > { %v1913_v45 = vadd.f32 %v1755_v40, %v4816_v21  ;;  %v2874_v58 = vpop.f32.mrb[98].mxu0 }
 0x1ef   : > { %v1770_v13 = vadd.f32 %v2874_v58, %v1544_v33  ;;  %v1764_v28 = vpop.f32.mrb[99].mxu0  ;;  %v1946_v41 = vmax.f32 %v1914_v49, 0.0 }
 0x1f0   : > { %v1945_v51 = vmax.f32 %v1913_v45, 0.0  ;;  %v1574_v52 = vpop.f32.mrb[114].mxu1  ;;  %v1765_v61 = vadd.f32 %v1764_v28, %v1539_v9 }
 0x1f1   : > { %v1916_v38 = vadd.f32 %v1770_v13, %v4821_v43  ;;  %v1576_v7 = vpop.f32.mrb[115].mxu1 }
 0x1f2   : > { %v1915_v18 = vadd.f32 %v1765_v61, %v4824_v14  ;;  %v2877_v44 = vpop.f32.mrb[100].mxu0  ;;  %2933 = vmatprep.mubr.msk.f32.mxu0 %vm1985_vm0, %v1945_v51 }
 0x1f3   : > { %v1780_v63 = vadd.f32 %v2877_v44, %v1554_v36  ;;  %v1774_v35 = vpop.f32.mrb[101].mxu0  ;;  %2934 = vmatmul.mubr.msk.f32.vlgmr.msra.gmra.mrb[120].mxu0 %vm1985_vm0, %v1946_v41  ;;  %v1948_v34 = vmax.f32 %v1916_v38, 0.0 }
 0x1f4   : > { %v1947_v21 = vmax.f32 %v1915_v18, 0.0  ;;  %v1579_v33 = vpop.f32.mrb[116].mxu1  ;;  %v1775_v59 = vadd.f32 %v1774_v35, %v1549_v22 }
 0x1f5   : > { %v1918_v17 = vadd.f32 %v1780_v63, %v4829_v2  ;;  %v1581_v9 = vpop.f32.mrb[117].mxu1 }
 0x1f6   : > { %v1917_v25 = vadd.f32 %v1775_v59, %v4832_v39  ;;  %v2880_v43 = vpop.f32.mrb[102].mxu0  ;;  %2936 = vmatprep.mubr.msk.f32.mxu0 %vm1985_vm0, %v1947_v21 }
 0x1f7   : > { %v1790_v14 = vadd.f32 %v2880_v43, %v1564_v46  ;;  %v1784_v10 = vpop.f32.mrb[103].mxu0  ;;  %2937 = vmatmul.mubr.msk.f32.gmra.mrb[122].mxu0 %vm1985_vm0, %v1948_v34  ;;  %v1950_v37 = vmax.f32 %v1918_v17, 0.0 }
 0x1f8   : > { %v1949_v36 = vmax.f32 %v1917_v25, 0.0  ;;  %v1584_v24 = vpop.f32.mrb[118].mxu1  ;;  %v1785_v8 = vadd.f32 %v1784_v10, %v1559_v56 }
 0x1f9   : > { %v1920_v20 = vadd.f32 %v1790_v14, %v4837_v55  ;;  %v1586_v22 = vpop.f32.mrb[119].mxu1 }
 0x1fa   : > { %v1919_v40 = vadd.f32 %v1785_v8, %v4840_v42  ;;  %v2883_v2 = vpop.f32.mrb[104].mxu0  ;;  %2939 = vmatprep.mubr.msk.f32.mxu0 %vm1985_vm0, %v1949_v36 }
 0x1fb   : > { %v1800_v39 = vadd.f32 %v2883_v2, %v1574_v52  ;;  %v1794_v49 = vpop.f32.mrb[105].mxu0  ;;  %2940 = vmatmul.mubr.msk.f32.gmra.mrb[124].mxu0 %vm1985_vm0, %v1950_v37  ;;  %v1952_v58 = vmax.f32 %v1920_v20, 0.0 }
 0x1fc   : > { %v1951_v46 = vmax.f32 %v1919_v40, 0.0  ;;  %v1589_v19 = vpop.f32.mrb[120].mxu1  ;;  %v1795_v45 = vadd.f32 %v1794_v49, %v1569_v31 }
 0x1fd   : > { %v1922_v13 = vadd.f32 %v1800_v39, %v4843_v54  ;;  %v1591_v56 = vpop.f32.mrb[121].mxu1 }
 0x1fe   : > { %v1921_v28 = vadd.f32 %v1795_v45, %v4846_v47  ;;  %v2886_v55 = vpop.f32.mrb[106].mxu0  ;;  %2942 = vmatprep.mubr.msk.f32.mxu0 %vm1985_vm0, %v1951_v46 }
 0x1ff   : > { %v1810_v42 = vadd.f32 %v2886_v55, %v1584_v24  ;;  %v1804_v51 = vpop.f32.mrb[107].mxu0  ;;  %2943 = vmatmul.mubr.msk.f32.gmra.mrb[126].mxu0 %vm1985_vm0, %v1952_v58  ;;  %v1954_v38 = vmax.f32 %v1922_v13, 0.0 }
 0x200   : > { %v1953_v52 = vmax.f32 %v1921_v28, 0.0  ;;  %v1594_v61 = vpop.f32.mrb[122].mxu1  ;;  %v1805_v41 = vadd.f32 %v1804_v51, %v1579_v33 }
 0x201   : > { %v1924_v7 = vadd.f32 %v1810_v42, %v4849_v23  ;;  %v1596_v31 = vpop.f32.mrb[123].mxu1 }
 0x202   : > { %v1923_v18 = vadd.f32 %v1805_v41, %v4852_v4  ;;  %v2889_v54 = vpop.f32.mrb[108].mxu0  ;;  %2945 = vmatprep.mubr.msk.f32.mxu0 %vm1985_vm0, %v1953_v52 }
 0x203   : > { %v1820_v47 = vadd.f32 %v2889_v54, %v1594_v61  ;;  %v1814_v44 = vpop.f32.mrb[109].mxu0  ;;  %2946 = vmatmul.mubr.msk.f32.gmra.mrb[128].mxu0 %vm1985_vm0, %v1954_v38  ;;  %v1956_v59 = vmax.f32 %v1924_v7, 0.0 }
 0x204   : > { %v1955_v63 = vmax.f32 %v1923_v18, 0.0  ;;  %v1599_v35 = vpop.f32.mrb[124].mxu1  ;;  %v1815_v21 = vadd.f32 %v1814_v44, %v1589_v19 }
 0x205   : > { %v1926_v34 = vadd.f32 %v1820_v47, %v4855_v53  ;;  %v1601_v33 = vpop.f32.mrb[125].mxu1 }
 0x206   : > { %v1925_v17 = vadd.f32 %v1815_v21, %v4858_v29  ;;  %v2892_v23 = vpop.f32.mrb[110].mxu0  ;;  %2948 = vmatprep.mubr.msk.f32.mxu0 %vm1985_vm0, %v1955_v63 }
 0x207   : > { %v1824_v4 = vpop.f32.mrb[111].mxu0  ;;  %2949 = vmatmul.mubr.msk.f32.gmra.mrb[130].mxu0 %vm1985_vm0, %v1956_v59  ;;  %v1958_v14 = vmax.f32 %v1926_v34, 0.0 }
 0x208   : > { %v1957_v9 = vmax.f32 %v1925_v17, 0.0  ;;  %v1604_v25 = vpop.f32.mrb[126].mxu1  ;;  %v1825_v43 = vadd.f32 %v1824_v4, %v1599_v35 }
 0x209   : > { %v1830_v10 = vadd.f32 %v2892_v23, %v1604_v25  ;;  %v1606_v36 = vpop.f32.mrb[127].mxu1 }
 0x20a   : > { %v1927_v24 = vadd.f32 %v1825_v43, %v4864_v27  ;;  %v2895_v8 = vpop.f32.mrb[112].mxu0  ;;  %2951 = vmatprep.mubr.msk.f32.mxu0 %vm1985_vm0, %v1957_v9 }
 0x20b   : > { %v1928_v53 = vadd.f32 %v1830_v10, %v4861_v60  ;;  %v1834_v29 = vpop.f32.mrb[113].mxu0  ;;  %2952 = vmatmul.mubr.msk.f32.gmra.mrb[132].mxu0 %vm1985_vm0, %v1958_v14 }
 0x20c   : > { %v1959_v37 = vmax.f32 %v1927_v24, 0.0  ;;  %v1609_v20 = vpop.f32.mrb[128].mxu1 }
 0x20d   : > { %v1960_v22 = vmax.f32 %v1928_v53, 0.0  ;;  %v1835_v40 = vadd.f32 %v1834_v29, %v1609_v20  ;;  %v1611_v2 = vpop.f32.mrb[129].mxu1 }
 0x20e   : > { %2954 = vmatprep.mubr.msk.f32.mxu0 %vm1985_vm0, %v1959_v37  ;;  %v2898_v39 = vpop.f32.mrb[114].mxu0 }
 0x20f   : > { %v1929_v49 = vadd.f32 %v1835_v40, %v4870_v16  ;;  %2955 = vmatmul.mubr.msk.f32.gmra.mrb[134].mxu0 %vm1985_vm0, %v1960_v22  ;;  %v1844_v27 = vpop.f32.mrb[115].mxu0 }
 0x210   : > { %v1614_v46 = vpop.f32.mrb[130].mxu1 }
 0x211   : > { %v1961_v19 = vmax.f32 %v1929_v49, 0.0  ;;  %v1840_v45 = vadd.f32 %v2895_v8, %v1614_v46  ;;  %v1616_v60 = vpop.f32.mrb[131].mxu1 }
 0x212   : > { %v2901_v58 = vpop.f32.mrb[116].mxu0 }
 0x213   : > { %v1930_v13 = vadd.f32 %v1840_v45, %v4867_v11  ;;  %2957 = vmatprep.mubr.msk.f32.mxu0 %vm1985_vm0, %v1961_v19  ;;  %v1854_v56 = vpop.f32.mrb[117].mxu0 }
 0x214   : > { %v1619_v28 = vpop.f32.mrb[132].mxu1 }
 0x215   : > { %v1962_v55 = vmax.f32 %v1930_v13, 0.0  ;;  %v1845_v42 = vadd.f32 %v1844_v27, %v1619_v28  ;;  %v1621_v51 = vpop.f32.mrb[133].mxu1 }
 0x216   : > { %v2904_v52 = vpop.f32.mrb[118].mxu0 }
 0x217   : > { %v1931_v16 = vadd.f32 %v1845_v42, %v4876_v1  ;;  %2958 = vmatmul.mubr.msk.f32.gmra.mrb[136].mxu0 %vm1985_vm0, %v1962_v55  ;;  %v1864_v61 = vpop.f32.mrb[119].mxu0 }
 0x218   : > { %v1624_v41 = vpop.f32.mrb[134].mxu1 }
 0x219   : > { %v1963_v38 = vmax.f32 %v1931_v16, 0.0  ;;  %v1850_v7 = vadd.f32 %v2898_v39, %v1624_v41  ;;  %v1626_v31 = vpop.f32.mrb[135].mxu1 }
 0x21b   : > { %v1932_v18 = vadd.f32 %v1850_v7, %v4873_v5  ;;  %2960 = vmatprep.mubr.msk.f32.mxu0 %vm1985_vm0, %v1963_v38 }
 0x21c   : > { %v1629_v11 = vpop.f32.mrb[136].mxu1 }
 0x21d   : > { %v1964_v54 = vmax.f32 %v1932_v18, 0.0  ;;  %v1855_v47 = vadd.f32 %v1854_v56, %v1629_v11  ;;  %v1631_v44 = vpop.f32.mrb[137].mxu1 }
 0x21f   : > { %v1933_v63 = vadd.f32 %v1855_v47, %v4882_v26  ;;  %2961 = vmatmul.mubr.msk.f32.gmra.mrb[138].mxu0 %vm1985_vm0, %v1964_v54 }
 0x220   : > { %v1634_v1 = vpop.f32.mrb[138].mxu1 }
 0x221   : > { %v1965_v35 = vmax.f32 %v1933_v63, 0.0  ;;  %v1860_v21 = vadd.f32 %v2901_v58, %v1634_v1  ;;  %v1636_v59 = vpop.f32.mrb[139].mxu1 }
 0x222   : > { %v3347_v59 = vld [vmem:[%s3617_s11 + $0x8] sm:$0xff] }
 0x223   : > { %v1934_v34 = vadd.f32 %v1860_v21, %v4879_v6  ;;  %2963 = vmatprep.mubr.msk.f32.mxu0 %vm1985_vm0, %v1965_v35 }
 0x224   : > { %v1639_v33 = vpop.f32.mrb[140].mxu1 }
 0x225   : > { %v1966_v5 = vmax.f32 %v1934_v34, 0.0  ;;  %v1865_v17 = vadd.f32 %v1864_v61, %v1639_v33  ;;  %v1641_v23 = vpop.f32.mrb[141].mxu1  ;;  %v3348_v34 = vld [vmem:[%s3617_s11] sm:$0xff] }
 0x227   : > { %v1935_v4 = vadd.f32 %v1865_v17, %v4888_v32  ;;  %2964 = vmatmul.mubr.msk.f32.gmra.mrb[140].mxu0 %vm1985_vm0, %v1966_v5  ;;  %v3349_v17 = vld [vmem:[%s3617_s11 + $0x18] sm:$0xff] }
 0x228   : > { %v1644_v9 = vpop.f32.mrb[142].mxu1 }
 0x229   : > { %v1967_v26 = vmax.f32 %v1935_v4, 0.0  ;;  %v1870_v25 = vadd.f32 %v2904_v52, %v1644_v9  ;;  %v1646_v43 = vpop.f32.mrb[143].mxu1  ;;  %v3350_v9 = vld [vmem:[%s3617_s11 + $0x10] sm:$0xff] }
 0x22a   : > { %v3351_v43 = vld [vmem:[%s3617_s11 + $0x28] sm:$0xff] }
 0x22b   : > { %v1936_v14 = vadd.f32 %v1870_v25, %v4885_v30  ;;  %2966 = vmatprep.mubr.msk.f32.mxu0 %vm1985_vm0, %v1967_v26 }
 0x22c   : > { %v1649_v10 = vpop.f32.mrb[144].mxu1 }
 0x22d   : > { %v1968_v6 = vmax.f32 %v1936_v14, 0.0  ;;  %v1651_v36 = vpop.f32.mrb[145].mxu1 }
 0x22f   : > { %2967 = vmatmul.mubr.msk.f32.gmra.mrb[142].mxu0 %vm1985_vm0, %v1968_v6  ;;  %v3352_v6 = vld [vmem:[%s3617_s11 + $0x20] sm:$0xff] }
 0x230   : > { %v1654_v24 = vpop.f32.mrb[146].mxu1 }
 0x231   : > { %v1656_v8 = vpop.f32.mrb[147].mxu1 }
 0x232   : > { %v3353_v8 = vld [vmem:[%s3617_s11 + $0x38] sm:$0xff] }
 0x234   : > { %v1659_v53 = vpop.f32.mrb[148].mxu1 }
 0x235   : > { %v1661_v29 = vpop.f32.mrb[149].mxu1 }
 0x238   : > { %v1664_v32 = vpop.f32.mrb[150].mxu1 }
 0x239   : > { %v1666_v37 = vpop.f32.mrb[151].mxu1 }
 0x23c   : > { %v1669_v20 = vpop.f32.mrb[152].mxu1 }
 0x23d   : > { %v1671_v22 = vpop.f32.mrb[153].mxu1 }
 0x23e   : > { %v3355_v22 = vld [vmem:[%s3617_s11 + $0x48] sm:$0xff] }
 0x240   : > { %v1674_v40 = vpop.f32.mrb[154].mxu1 }
 0x241   : > { %v1676_v2 = vpop.f32.mrb[155].mxu1 }
 0x244   : > { %v1679_v39 = vpop.f32.mrb[156].mxu1 }
 0x245   : > { %v1681_v49 = vpop.f32.mrb[157].mxu1 }
 0x248   : > { %v1684_v30 = vpop.f32.mrb[158].mxu1 }
 0x249   : > { %v1686_v27 = vpop.f32.mrb[159].mxu1 }
 0x24a   : > { %v3357_v27 = vld [vmem:[%s3617_s11 + $0x58] sm:$0xff] }
 0x24c   : > { %v2907_v46 = vpop.f32.mrb[160].mxu1 }
 0x24d   : > { %v1880_v19 = vadd.f32 %v2907_v46, %v1654_v24  ;;  %v1874_v45 = vpop.f32.mrb[161].mxu1 }
 0x24e   : > { %v1875_v60 = vadd.f32 %v1874_v45, %v1649_v10  ;;  %v3358_v45 = vld [vmem:[%s3617_s11 + $0x50] sm:$0xff] }
 0x24f   : > { %v1938_v58 = vadd.f32 %v1880_v19, %v4891_v57 }
 0x250   : > { %v1937_v13 = vadd.f32 %v1875_v60, %v4894_v15  ;;  %v2910_v56 = vpop.f32.mrb[162].mxu1 }
 0x251   : > { %v1890_v28 = vadd.f32 %v2910_v56, %v1664_v32  ;;  %v1884_v55 = vpop.f32.mrb[163].mxu1  ;;  %v1970_v52 = vmax.f32 %v1938_v58, 0.0  ;;  %v3354_v32 = vld [vmem:[%s3617_s11 + $0x30] sm:$0xff] }
 0x252   : > { %v1969_v42 = vmax.f32 %v1937_v13, 0.0  ;;  %v1885_v51 = vadd.f32 %v1884_v55, %v1659_v53  ;;  %v3359_v13 = vld [vmem:[%s3617_s11 + $0x68] sm:$0xff]  ;;  %v3360_v55 = vld [vmem:[%s3617_s11 + $0x60] sm:$0xff] }
 0x253   : > { %v1940_v16 = vadd.f32 %v1890_v28, %v4896_v12 }
 0x254   : > { %v1939_v61 = vadd.f32 %v1885_v51, %v4899_v50  ;;  %v2913_v41 = vpop.f32.mrb[164].mxu1  ;;  %2969 = vmatprep.mubr.msk.f32.mxu0 %vm1985_vm0, %v1969_v42 }
 0x255   : > { %v1900_v38 = vadd.f32 %v2913_v41, %v1674_v40  ;;  %v1894_v7 = vpop.f32.mrb[165].mxu1  ;;  %2970 = vmatmul.mubr.msk.f32.gmra.mrb[144].mxu0 %vm1985_vm0, %v1970_v52  ;;  %v1972_v15 = vmax.f32 %v1940_v16, 0.0  ;;  %v3361_v52 = vld [vmem:[%s3617_s11 + $0x78] sm:$0xff]  ;;  %v3362_v41 = vld [vmem:[%s3617_s11 + $0x70] sm:$0xff] }
 0x256   : > { %v1971_v57 = vmax.f32 %v1939_v61, 0.0  ;;  %v1895_v31 = vadd.f32 %v1894_v7, %v1669_v20 }
 0x257   : > { %v1942_v18 = vadd.f32 %v1900_v38, %v4901_v3 }
 0x258   : > { %v1941_v11 = vadd.f32 %v1895_v31, %v4903_v0  ;;  %v2916_v54 = vpop.f32.mrb[166].mxu1  ;;  %2972 = vmatprep.mubr.msk.f32.mxu0 %vm1985_vm0, %v1971_v57  ;;  %v3363_v57 = vld [vmem:[%s3617_s11 + $0x88] sm:$0xff] }
 0x259   : > { %v1910_v12 = vadd.f32 %v2916_v54, %v1684_v30  ;;  %v1904_v50 = vpop.f32.mrb[167].mxu1  ;;  %2973 = vmatmul.mubr.msk.f32.gmra.mrb[146].mxu0 %vm1985_vm0, %v1972_v15  ;;  %v1974_v63 = vmax.f32 %v1942_v18, 0.0  ;;  %v3364_v18 = vld [vmem:[%s3617_s11 + $0x80] sm:$0xff] }
 0x25a   : > { %v1973_v47 = vmax.f32 %v1941_v11, 0.0  ;;  %v1905_v44 = vadd.f32 %v1904_v50, %v1679_v39  ;;  %v3356_v39 = vld [vmem:[%s3617_s11 + $0x40] sm:$0xff] }
 0x25b   : > { %v1944_v1 = vadd.f32 %v1910_v12, %v4905_v62  ;;  %v3365_v12 = vld [vmem:[%s3617_s11 + $0x98] sm:$0xff] }
 0x25c   : > { %v1943_v3 = vadd.f32 %v1905_v44, %v4907_v48  ;;  %2975 = vmatprep.mubr.msk.f32.mxu0 %vm1985_vm0, %v1973_v47  ;;  %v3366_v44 = vld [vmem:[%s3617_s11 + $0x90] sm:$0xff] }
 0x25d   : > { %2976 = vmatmul.mubr.msk.f32.gmra.mrb[148].mxu0 %vm1985_vm0, %v1974_v63  ;;  %v1976_v35 = vmax.f32 %v1944_v1, 0.0 }
 0x25e   : > { %v1975_v0 = vmax.f32 %v1943_v3, 0.0  ;;  %v3367_v3 = vld [vmem:[%s3617_s11 + $0xa8] sm:$0xff] }
 0x260   : > { %2978 = vmatprep.mubr.msk.f32.mxu0 %vm1985_vm0, %v1975_v0 }
 0x261   : > { %2979 = vmatmul.mubr.msk.f32.gmra.mrb[150].mxu0 %vm1985_vm0, %v1976_v35 }
 0x2c6   : > { %v2935_v21 = vpop.f32.mrb[120].mxu0 }
 0x2c7   : > { %v2308_v62 = vadd.f32 %v3347_v59, %v2935_v21  ;;  %v2148_v48 = vpop.f32.mrb[121].mxu0  ;;  %v3368_v21 = vld [vmem:[%s3617_s11 + $0xa0] sm:$0xff] }
 0x2c8   : > { %v2307_v33 = vadd.f32 %v3348_v34, %v2148_v48  ;;  %v3369_v48 = vld [vmem:[%s3617_s11 + $0xb8] sm:$0xff] }
 0x2c9   : > { %2340 = vst [vmem:[%s4978_s27 + $0x8] sm:$0xff] %v2308_v62 }
 0x2ca   : > { %2339 = vst [vmem:[%s4978_s27] sm:$0xff] %v2307_v33  ;;  %v2938_v5 = vpop.f32.mrb[122].mxu0 }
 0x2cb   : > { %v2310_v23 = vadd.f32 %v3349_v17, %v2938_v5  ;;  %v2158_v4 = vpop.f32.mrb[123].mxu0  ;;  %v3370_v5 = vld [vmem:[%s3617_s11 + $0xb0] sm:$0xff] }
 0x2cc   : > { %v2309_v26 = vadd.f32 %v3350_v9, %v2158_v4  ;;  %v3371_v4 = vld [vmem:[%s3617_s11 + $0xc8] sm:$0xff] }
 0x2cd   : > { %2342 = vst [vmem:[%s4978_s27 + $0x18] sm:$0xff] %v2310_v23 }
 0x2ce   : > { %2341 = vst [vmem:[%s4978_s27 + $0x10] sm:$0xff] %v2309_v26  ;;  %v2941_v25 = vpop.f32.mrb[124].mxu0 }
 0x2cf   : > { %v2312_v14 = vadd.f32 %v3351_v43, %v2941_v25  ;;  %v2168_v10 = vpop.f32.mrb[125].mxu0  ;;  %v3372_v25 = vld [vmem:[%s3617_s11 + $0xc0] sm:$0xff] }
 0x2d0   : > { %v2311_v36 = vadd.f32 %v3352_v6, %v2168_v10  ;;  %v3373_v10 = vld [vmem:[%s3617_s11 + $0xd8] sm:$0xff] }
 0x2d1   : > { %2344 = vst [vmem:[%s4978_s27 + $0x28] sm:$0xff] %v2312_v14 }
 0x2d2   : > { %2343 = vst [vmem:[%s4978_s27 + $0x20] sm:$0xff] %v2311_v36  ;;  %v2944_v24 = vpop.f32.mrb[126].mxu0 }
 0x2d3   : > { %v2314_v53 = vadd.f32 %v3353_v8, %v2944_v24  ;;  %v2178_v29 = vpop.f32.mrb[127].mxu0  ;;  %v3374_v24 = vld [vmem:[%s3617_s11 + $0xd0] sm:$0xff] }
 0x2d4   : > { %v2313_v37 = vadd.f32 %v3354_v32, %v2178_v29  ;;  %v3375_v29 = vld [vmem:[%s3617_s11 + $0xe8] sm:$0xff] }
 0x2d5   : > { %2346 = vst [vmem:[%s4978_s27 + $0x38] sm:$0xff] %v2314_v53 }
 0x2d6   : > { %2345 = vst [vmem:[%s4978_s27 + $0x30] sm:$0xff] %v2313_v37  ;;  %v2947_v20 = vpop.f32.mrb[128].mxu0 }
 0x2d7   : > { %v2316_v40 = vadd.f32 %v3355_v22, %v2947_v20  ;;  %v2188_v2 = vpop.f32.mrb[129].mxu0  ;;  %v3376_v20 = vld [vmem:[%s3617_s11 + $0xe0] sm:$0xff] }
 0x2d8   : > { %v2315_v49 = vadd.f32 %v3356_v39, %v2188_v2  ;;  %v3377_v2 = vld [vmem:[%s3617_s11 + $0xf8] sm:$0xff] }
 0x2d9   : > { %2348 = vst [vmem:[%s4978_s27 + $0x48] sm:$0xff] %v2316_v40 }
 0x2da   : > { %2347 = vst [vmem:[%s4978_s27 + $0x40] sm:$0xff] %v2315_v49  ;;  %v2950_v30 = vpop.f32.mrb[130].mxu0 }
 0x2db   : > { %v2318_v46 = vadd.f32 %v3357_v27, %v2950_v30  ;;  %v2198_v19 = vpop.f32.mrb[131].mxu0  ;;  %v3378_v30 = vld [vmem:[%s3617_s11 + $0xf0] sm:$0xff] }
 0x2dc   : > { %v2317_v60 = vadd.f32 %v3358_v45, %v2198_v19 }
 0x2dd   : > { %2350 = vst [vmem:[%s4978_s27 + $0x58] sm:$0xff] %v2318_v46 }
 0x2de   : > { %2349 = vst [vmem:[%s4978_s27 + $0x50] sm:$0xff] %v2317_v60  ;;  %v2953_v58 = vpop.f32.mrb[132].mxu0 }
 0x2df   : > { %v2320_v56 = vadd.f32 %v3359_v13, %v2953_v58  ;;  %v2208_v28 = vpop.f32.mrb[133].mxu0 }
 0x2e0   : > { %v2319_v42 = vadd.f32 %v3360_v55, %v2208_v28 }
 0x2e1   : > { %2352 = vst [vmem:[%s4978_s27 + $0x68] sm:$0xff] %v2320_v56 }
 0x2e2   : > { %2351 = vst [vmem:[%s4978_s27 + $0x60] sm:$0xff] %v2319_v42  ;;  %v2956_v51 = vpop.f32.mrb[134].mxu0 }
 0x2e3   : > { %v2322_v16 = vadd.f32 %v3361_v52, %v2956_v51  ;;  %v2218_v61 = vpop.f32.mrb[135].mxu0 }
 0x2e4   : > { %v2321_v38 = vadd.f32 %v3362_v41, %v2218_v61 }
 0x2e5   : > { %2354 = vst [vmem:[%s4978_s27 + $0x78] sm:$0xff] %v2322_v16 }
 0x2e6   : > { %2353 = vst [vmem:[%s4978_s27 + $0x70] sm:$0xff] %v2321_v38 }
 0x2ea   : > { %v2959_v7 = vpop.f32.mrb[136].mxu0 }
 0x2eb   : > { %v2324_v31 = vadd.f32 %v3363_v57, %v2959_v7  ;;  %v2228_v15 = vpop.f32.mrb[137].mxu0 }
 0x2ec   : > { %v2323_v11 = vadd.f32 %v3364_v18, %v2228_v15 }
 0x2ed   : > { %2356 = vst [vmem:[%s4978_s27 + $0x88] sm:$0xff] %v2324_v31 }
 0x2ee   : > { %2355 = vst [vmem:[%s4978_s27 + $0x80] sm:$0xff] %v2323_v11 }
 0x2f2   : > { %v2962_v54 = vpop.f32.mrb[138].mxu0 }
 0x2f3   : > { %v2326_v50 = vadd.f32 %v3365_v12, %v2962_v54  ;;  %v2238_v47 = vpop.f32.mrb[139].mxu0 }
 0x2f4   : > { %v2325_v63 = vadd.f32 %v3366_v44, %v2238_v47 }
 0x2f5   : > { %2358 = vst [vmem:[%s4978_s27 + $0x98] sm:$0xff] %v2326_v50 }
 0x2f6   : > { %2357 = vst [vmem:[%s4978_s27 + $0x90] sm:$0xff] %v2325_v63 }
 0x2fa   : > { %v2965_v1 = vpop.f32.mrb[140].mxu0 }
 0x2fb   : > { %v2328_v0 = vadd.f32 %v3367_v3, %v2965_v1  ;;  %v2248_v35 = vpop.f32.mrb[141].mxu0 }
 0x2fc   : > { %v2327_v59 = vadd.f32 %v3368_v21, %v2248_v35 }
 0x2fd   : > { %2360 = vst [vmem:[%s4978_s27 + $0xa8] sm:$0xff] %v2328_v0 }
 0x2fe   : > { %2359 = vst [vmem:[%s4978_s27 + $0xa0] sm:$0xff] %v2327_v59 }
 0x302   : > { %v2968_v62 = vpop.f32.mrb[142].mxu0 }
 0x303   : > { %v2330_v34 = vadd.f32 %v3369_v48, %v2968_v62  ;;  %v2258_v33 = vpop.f32.mrb[143].mxu0 }
 0x304   : > { %v2329_v17 = vadd.f32 %v3370_v5, %v2258_v33 }
 0x305   : > { %2362 = vst [vmem:[%s4978_s27 + $0xb8] sm:$0xff] %v2330_v34 }
 0x306   : > { %2361 = vst [vmem:[%s4978_s27 + $0xb0] sm:$0xff] %v2329_v17 }
 0x328   : > { %v2971_v23 = vpop.f32.mrb[144].mxu0 }
 0x329   : > { %v2332_v9 = vadd.f32 %v3371_v4, %v2971_v23  ;;  %v2268_v26 = vpop.f32.mrb[145].mxu0 }
 0x32a   : > { %v2331_v43 = vadd.f32 %v3372_v25, %v2268_v26 }
 0x32b   : > { %2364 = vst [vmem:[%s4978_s27 + $0xc8] sm:$0xff] %v2332_v9 }
 0x32c   : > { %2363 = vst [vmem:[%s4978_s27 + $0xc0] sm:$0xff] %v2331_v43  ;;  %v2974_v14 = vpop.f32.mrb[146].mxu0 }
 0x32d   : > { %v2334_v6 = vadd.f32 %v3373_v10, %v2974_v14  ;;  %v2278_v36 = vpop.f32.mrb[147].mxu0 }
 0x32e   : > { %v2333_v8 = vadd.f32 %v3374_v24, %v2278_v36 }
 0x32f   : > { %2366 = vst [vmem:[%s4978_s27 + $0xd8] sm:$0xff] %v2334_v6 }
 0x330   : > { %2365 = vst [vmem:[%s4978_s27 + $0xd0] sm:$0xff] %v2333_v8  ;;  %v2977_v53 = vpop.f32.mrb[148].mxu0 }
 0x331   : > { %v2336_v32 = vadd.f32 %v3375_v29, %v2977_v53  ;;  %v2288_v37 = vpop.f32.mrb[149].mxu0 }
 0x332   : > { %v2335_v22 = vadd.f32 %v3376_v20, %v2288_v37 }
 0x333   : > { %2368 = vst [vmem:[%s4978_s27 + $0xe8] sm:$0xff] %v2336_v32 }
 0x334   : > { %2367 = vst [vmem:[%s4978_s27 + $0xe0] sm:$0xff] %v2335_v22  ;;  %v2980_v40 = vpop.f32.mrb[150].mxu0 }
 0x335   : > { %v2338_v39 = vadd.f32 %v3377_v2, %v2980_v40  ;;  %v2298_v49 = vpop.f32.mrb[151].mxu0 }
 0x336   : > { %v2337_v27 = vadd.f32 %v3378_v30, %v2298_v49 }
 0x337   : > { %2370 = vst [vmem:[%s4978_s27 + $0xf8] sm:$0xff] %v2338_v39 }
 0x338   : > { %2369 = vst [vmem:[%s4978_s27 + $0xf0] sm:$0xff] %v2337_v27 }
 0x339   : > { %3392 = shalt.err (!%p3389_p3)
}
 0x33a   : > { %s3393_s11 = scalar_lea.hbm %s5044_s5, 4096  ;;  %s3397_s19 = scalar_lea.hbm %s5097_s3, 8192 }
 0x33b   : > { %p3394_p4 = scmp.ne.s32.totalorder %s5044_s5, %s3393_s11  ;;  %p3398_p9 = scmp.lt.u32.totalorder %s5044_s5, %s5097_s3 }
 0x33c   : > { %p3399_p10 = scmp.lt.u32.totalorder %s3397_s19, %s3393_s11  ;;  %p3401_p12 = scmp.lt.u32.totalorder %s3393_s11, %s5044_s5 }
 0x33d   : > { %p3395_p7 = pnand %p3394_p4, %p3506_p5 }
 0x33e   : > { %p3400_p11 = por %p3399_p10, %p3398_p9 }
 0x33f   : > { %p3396_p8 = pneg %p3395_p7 }
 0x340   : > { %p3402_p13 = por %p3401_p12, %p3400_p11 }
 0x342   : > { %p3403_p0 = pnand %p3402_p13, %p3396_p8 }
 0x344   : > { %3406 = shalt.err (!%p3403_p0)
}
 0x345   : > { %s3446_s25 = smov 128   ;;  %s3447_s26 = smov 8  }
 0x346   : > { %3253 = dma.vmem_to_hbm [thread:$0]  (%p3506_p5), %s5046_s29, 4096, %s5044_s5, %s5053_s16, %s3446_s25, %s3446_s25, %s3447_s26  }
 0x347 PF: > { %p3259_p1 = scmp.ge.s32.totalorder %s3441_s15, 2  ;;  %s2400_s27 = sand.u32 1, %s3429_s12  }
 0x348   : > { %s2401_s28 = scalar_lea.sflag [#allocation4], %s2400_s27 }
 0x349   : > { %p3256_p2 = pnand %p3259_p1, %p3510_p6 }
 0x34b   : > { %3424 = dma.done.wait (!%p3256_p2), %s2401_s28, 4096  }
 0x34c   : > { %3426 = vsyncadd (!%p3256_p2), %s2401_s28, 4294963200  ;;  %p13_p3 = scmp.ge.s32.totalorder %s3493_s18, 4   ;;  %s5175_s12 = smov %s3433_s13 }
 0x34d   : > { %s5176_s13 = smov %s3437_s14  ;;  %s5177_s14 = smov %s3504_s21 }
 0x34e   : > { %s5178_s15 = smov %s3493_s18  ;;  %15 = sbr.rel (!%p13_p3) target bundleno = 3 (0x3), region = 69 }
 0x355   :  { %2406 = vsyncpa [#allocation4], 1 }
 0x356   :  { %2408 = vsyncpa [#allocation4 + $0x1], 1 }

</bundles_post_ra>
